<compile_context>
chip_gen: v5e
topology: v5e:2x2
jax: 0.10.0
libtpu: 0.0.40
codegen_flags: <defaults>
</compile_context>

<pallas_src>
import jax
import jax.numpy as jnp
import numpy as np
from jax.experimental import pallas as pl
from jax.experimental.pallas import tpu as pltpu


def _round_up(x, m):
    return ((x + m - 1) // m) * m


def rnn_net_kernel(ig_ref,                 # (T, Bt, H) pre-projected inputs
                   whh0_ref,               # (H, H)
                   w1_ref, b1_ref,         # (2H, H), (1, H)  [wih1; whh1]
                   w2_ref, b2_ref,         # (2H, H), (1, H)  [wih2; whh2]
                   wfin_ref, bfin_ref,     # (H, OUT_PAD), (1, OUT_PAD)
                   out_ref):               # (Bt, OUT_PAD)
    T, Bt, H = ig_ref.shape

    # Biases are broadcast ONCE (cheap, 1 vreg each) so the unrolled loop
    # does not re-emit broadcast_in_dim every iteration.
    b1 = jnp.broadcast_to(b1_ref[...], (Bt, H))
    b2 = jnp.broadcast_to(b2_ref[...], (Bt, H))

    zeros = jnp.zeros((Bt, H), jnp.float32)
    h0, h1, h2, acc = zeros, zeros, zeros, zeros

    # Wavefront over layers: at step s, layer 0 computes time s, layer 1
    # time s-1, layer 2 time s-2.  Each update reads the OLD carries, so the
    # per-step matmuls are independent and pipeline on the MXU.
    for s in range(T + 2):
        nh0, nh1, nh2 = h0, h1, h2
        if s < T:
            # layer 0: input projection (+bias) already folded into ig.
            nh0 = jnp.tanh(
                ig_ref[s]
                + jnp.dot(h0, whh0_ref[...],
                          preferred_element_type=jnp.float32))
        if 1 <= s <= T:
            # layer 1: one K=2H matmul; rows of w1 = [wih1; whh1] match the
            # concat([h0, h1], -1) column order.
            nh1 = jnp.tanh(
                jnp.dot(jnp.concatenate([h0, h1], axis=-1), w1_ref[...],
                        preferred_element_type=jnp.float32)
                + b1)
        if 2 <= s <= T + 1:
            nh2 = jnp.tanh(
                jnp.dot(jnp.concatenate([h1, h2], axis=-1), w2_ref[...],
                        preferred_element_type=jnp.float32)
                + b2)
            # Intentional double tanh: nh2 is the RNN output (already tanh),
            # and the module applies an explicit self.tahn(x) on top before
            # the mean.  Accumulate tanh(nh2) so layer-2 outputs are never
            # materialized as a (T, Bt, H) buffer.
            acc = acc + jnp.tanh(nh2)
        h0, h1, h2 = nh0, nh1, nh2

    mean_h = acc * (1.0 / T)                       # x.mean(dim=1)
    out_ref[...] = (jnp.dot(mean_h, wfin_ref[...],
                            preferred_element_type=jnp.float32)
                    + bfin_ref[...])


def rnn_net_forward(text, params):
    """text: (B, T) int32 token ids; params hold transposed (in,out) weights."""
    B, T = text.shape
    H = params["emb"].shape[1]
    OUT = params["fin_w"].shape[1]

    # ---- fold Embedding + layer-0 input projection (+ fused bias) ----------
    #   emb[token] @ W_ih0 + b0  ==  (emb_table @ W_ih0 + b0)[token]
    # Full-f32 precision so the kernel-side numerics match a true f32 matmul.
    etab = (jnp.dot(params["emb"].astype(jnp.float32), params["wih0"],
                    precision=jax.lax.Precision.HIGHEST)
            + params["b0"])                                   # (V, H)
    # TODO(synk): the token gather itself stays in XLA glue; an in-kernel
    # gather (token ids via PrefetchScalarGridSpec + E' as a whole VMEM
    # block) would also remove this (B,T,H) HBM round trip.
    ig = jnp.take(etab, text, axis=0)                         # (B, T, H)

    # ---- batch tiling -------------------------------------------------------
    if B <= 8:
        B_TILE = 8
    else:
        # <=256 rows/tile (fills the v6e/v7x 256-deep MXU; fine on v5e) while
        # keeping >=2 grid tiles so a second TensorCore (v7x) gets work.
        B_TILE = min(256, _round_up(-(-B // 2), 8))
    B_pad = _round_up(B, B_TILE)
    if B_pad != B:
        # Padded rows run on zero inputs and produce garbage states; they are
        # sliced away below and never reduced across the batch in-kernel.
        ig = jnp.pad(ig, ((0, B_pad - B), (0, 0), (0, 0)))
    ig_tm = jnp.transpose(ig, (1, 0, 2))                      # (T, B_pad, H)
    num_tiles = B_pad // B_TILE

    # ---- stacked recurrent weights for the K=2H fused matmuls --------------
    # Row order MUST match concat([h_prev_layer, h_this_layer], axis=-1).
    w1 = jnp.concatenate([params["wih1"], params["whh1"]], axis=0)  # (2H, H)
    w2 = jnp.concatenate([params["wih2"], params["whh2"]], axis=0)  # (2H, H)

    # ---- lane-pad the head so the output store is lane-dense (>=128) -------
    OUT_PAD = _round_up(max(OUT, 128), 128)
    wfin = jnp.pad(params["fin_w"], ((0, 0), (0, OUT_PAD - OUT)))
    bfin = jnp.pad(params["fin_b"], ((0, 0), (0, OUT_PAD - OUT)))

    # Grid-invariant blocks: single-buffer them when there is a pipeline.
    const_kw = {} if num_tiles == 1 else dict(pipeline_mode=pl.Buffered(1))
    w0_spec = pl.BlockSpec((H, H), lambda i: (0, 0), **const_kw)
    ws_spec = pl.BlockSpec((2 * H, H), lambda i: (0, 0), **const_kw)
    b_spec = pl.BlockSpec((1, H), lambda i: (0, 0), **const_kw)
    wfin_spec = pl.BlockSpec((H, OUT_PAD), lambda i: (0, 0), **const_kw)
    bfin_spec = pl.BlockSpec((1, OUT_PAD), lambda i: (0, 0), **const_kw)

    out = pl.pallas_call(
        rnn_net_kernel,
        out_shape=jax.ShapeDtypeStruct((B_pad, OUT_PAD), jnp.float32),
        grid=(num_tiles,),
        in_specs=[pl.BlockSpec((T, B_TILE, H), lambda i: (0, i, 0)),
                  w0_spec,
                  ws_spec, b_spec,
                  ws_spec, b_spec,
                  wfin_spec, bfin_spec],
        out_specs=pl.BlockSpec((B_TILE, OUT_PAD), lambda i: (i, 0)),
        compiler_params=pltpu.CompilerParams(
            dimension_semantics=("parallel",)),
    )(ig_tm,
      params["whh0"],
      w1, params["b1"],
      w2, params["b2"],
      wfin, bfin)
    return out[:B, :OUT]


def reference(text, params):
    """Pure-JAX reference mirroring the PyTorch rnn_net forward."""
    ebm = jnp.take(params["emb"], text, axis=0).astype(jnp.float32)  # (B, T, H)
    x = ebm
    for l in range(3):
        wih, whh, b = params[f"wih{l}"], params[f"whh{l}"], params[f"b{l}"][0]

        def step(h, x_t, wih=wih, whh=whh, b=b):
            h = jnp.tanh(x_t @ wih + h @ whh + b)
            return h, h

        init = jnp.zeros((x.shape[0], whh.shape[0]), jnp.float32)
        _, ys = jax.lax.scan(step, init, jnp.transpose(x, (1, 0, 2)))
        x = jnp.transpose(ys, (1, 0, 2))
    x = jnp.tanh(x)
    m = x.mean(axis=1)
    return m @ params["fin_w"] + params["fin_b"][0]


if __name__ == "__main__":
    B, T, H, V, OUT = 8, 8, 128, 50, 8     # batch, seq, hidden, vocab, out_size

    key = jax.random.PRNGKey(0)
    ks = jax.random.split(key, 16)
    k = 1.0 / float(np.sqrt(H))

    def u(kk, shape):
        return jax.random.uniform(kk, shape, jnp.float32, -k, k)

    params = {"emb": jax.random.normal(ks[0], (V, H), jnp.float32) * 0.1}
    idx = 1
    for l in range(3):
        # torch stores weight_ih_l{l}: (H, H) -> pass transposed (in, out)
        params[f"wih{l}"] = u(ks[idx], (H, H)); idx += 1
        params[f"whh{l}"] = u(ks[idx], (H, H)); idx += 1
        b_ih = u(ks[idx], (H,)); idx += 1
        b_hh = u(ks[idx], (H,)); idx += 1
        params[f"b{l}"] = (b_ih + b_hh).reshape(1, H)
    params["fin_w"] = u(ks[idx], (H, OUT)); idx += 1      # fin_lin.weight.T
    params["fin_b"] = u(ks[idx], (1, OUT)); idx += 1

    text = jax.random.randint(ks[idx], (B, T), 0, V, jnp.int32)

    out = jax.block_until_ready(rnn_net_forward(text, params))
    ref = jax.block_until_ready(reference(text, params))
    np.testing.assert_allclose(np.asarray(out), np.asarray(ref),
                               atol=2e-4, rtol=2e-4)
    print("KERNEL_OK")
</pallas_src>

<mosaic_0001>
module attributes {stable_mosaic.version = 11 : i64} {
  func.func @rnn_net_kernel(%arg0: i32, %arg1: memref<8x8x128xf32, #tpu.memory_space<vmem>>, %arg2: memref<128x128xf32, #tpu.memory_space<vmem>>, %arg3: memref<256x128xf32, #tpu.memory_space<vmem>>, %arg4: memref<1x128xf32, #tpu.memory_space<vmem>>, %arg5: memref<256x128xf32, #tpu.memory_space<vmem>>, %arg6: memref<1x128xf32, #tpu.memory_space<vmem>>, %arg7: memref<128x128xf32, #tpu.memory_space<vmem>>, %arg8: memref<1x128xf32, #tpu.memory_space<vmem>>, %arg9: memref<8x128xf32, #tpu.memory_space<vmem>>) attributes {dimension_semantics = [#tpu.dimension_semantics<parallel>], iteration_bounds = array<i64: 1>, scalar_prefetch = 0 : i64, scratch_operands = 0 : i64, tpu.core_type = #tpu.core_type<tc>, window_params = [{transform_indices = @transform_0, window_bounds = array<i64: 8, 8, 128>}, {pipeline_mode = #tpu.pipeline_mode<synchronous>, transform_indices = @transform_1, window_bounds = array<i64: 128, 128>}, {pipeline_mode = #tpu.pipeline_mode<synchronous>, transform_indices = @transform_2, window_bounds = array<i64: 256, 128>}, {pipeline_mode = #tpu.pipeline_mode<synchronous>, transform_indices = @transform_3, window_bounds = array<i64: 1, 128>}, {pipeline_mode = #tpu.pipeline_mode<synchronous>, transform_indices = @transform_4, window_bounds = array<i64: 256, 128>}, {pipeline_mode = #tpu.pipeline_mode<synchronous>, transform_indices = @transform_5, window_bounds = array<i64: 1, 128>}, {pipeline_mode = #tpu.pipeline_mode<synchronous>, transform_indices = @transform_6, window_bounds = array<i64: 128, 128>}, {pipeline_mode = #tpu.pipeline_mode<synchronous>, transform_indices = @transform_7, window_bounds = array<i64: 1, 128>}, {transform_indices = @transform_8, window_bounds = array<i64: 8, 128>}]} {
    %c0 = arith.constant 0 : index
    %c0_0 = arith.constant 0 : index
    %0 = vector.load %arg4[%c0, %c0_0] : memref<1x128xf32, #tpu.memory_space<vmem>>, vector<1x128xf32>
    %1 = vector.shape_cast %0 : vector<1x128xf32> to vector<1x128xf32>
    %2 = vector.broadcast %1 : vector<1x128xf32> to vector<8x128xf32>
    %c0_1 = arith.constant 0 : index
    %c0_2 = arith.constant 0 : index
    %3 = vector.load %arg6[%c0_1, %c0_2] : memref<1x128xf32, #tpu.memory_space<vmem>>, vector<1x128xf32>
    %4 = vector.shape_cast %3 : vector<1x128xf32> to vector<1x128xf32>
    %5 = vector.broadcast %4 : vector<1x128xf32> to vector<8x128xf32>
    %cst = arith.constant 0.000000e+00 : f32
    %6 = vector.broadcast %cst : f32 to vector<8x128xf32>
    %c0_3 = arith.constant 0 : index
    %c0_4 = arith.constant 0 : index
    %c0_5 = arith.constant 0 : index
    %7 = vector.load %arg1[%c0_3, %c0_4, %c0_5] : memref<8x8x128xf32, #tpu.memory_space<vmem>>, vector<1x8x128xf32>
    %8 = vector.shape_cast %7 : vector<1x8x128xf32> to vector<8x128xf32>
    %c0_6 = arith.constant 0 : index
    %c0_7 = arith.constant 0 : index
    %9 = vector.load %arg2[%c0_6, %c0_7] : memref<128x128xf32, #tpu.memory_space<vmem>>, vector<128x128xf32>
    %cst_8 = arith.constant dense<0.000000e+00> : vector<8x128xf32>
    %10 = tpu.matmul %6, %9, %cst_8 {dimension_numbers = #tpu.dot_dimension_numbers<[1], [0], [0], [1], [0, 0, 1, 1], [], []>} : vector<8x128xf32>, vector<128x128xf32>, vector<8x128xf32> -> vector<8x128xf32>
    %11 = arith.addf %8, %10 : vector<8x128xf32>
    %12 = math.tanh %11 : vector<8x128xf32>
    %c1 = arith.constant 1 : index
    %c0_9 = arith.constant 0 : index
    %c0_10 = arith.constant 0 : index
    %13 = vector.load %arg1[%c1, %c0_9, %c0_10] : memref<8x8x128xf32, #tpu.memory_space<vmem>>, vector<1x8x128xf32>
    %14 = vector.shape_cast %13 : vector<1x8x128xf32> to vector<8x128xf32>
    %c0_11 = arith.constant 0 : index
    %c0_12 = arith.constant 0 : index
    %15 = vector.load %arg2[%c0_11, %c0_12] : memref<128x128xf32, #tpu.memory_space<vmem>>, vector<128x128xf32>
    %cst_13 = arith.constant dense<0.000000e+00> : vector<8x128xf32>
    %16 = tpu.matmul %12, %15, %cst_13 {dimension_numbers = #tpu.dot_dimension_numbers<[1], [0], [0], [1], [0, 0, 1, 1], [], []>} : vector<8x128xf32>, vector<128x128xf32>, vector<8x128xf32> -> vector<8x128xf32>
    %17 = arith.addf %14, %16 : vector<8x128xf32>
    %18 = math.tanh %17 : vector<8x128xf32>
    %19 = tpu.concatenate %12, %6 in 1 : vector<8x128xf32>, vector<8x128xf32> -> vector<8x256xf32>
    %c0_14 = arith.constant 0 : index
    %c0_15 = arith.constant 0 : index
    %20 = vector.load %arg3[%c0_14, %c0_15] : memref<256x128xf32, #tpu.memory_space<vmem>>, vector<256x128xf32>
    %cst_16 = arith.constant dense<0.000000e+00> : vector<8x128xf32>
    %21 = tpu.matmul %19, %20, %cst_16 {dimension_numbers = #tpu.dot_dimension_numbers<[1], [0], [0], [1], [0, 0, 1, 1], [], []>} : vector<8x256xf32>, vector<256x128xf32>, vector<8x128xf32> -> vector<8x128xf32>
    %22 = arith.addf %21, %2 : vector<8x128xf32>
    %23 = math.tanh %22 : vector<8x128xf32>
    %c2 = arith.constant 2 : index
    %c0_17 = arith.constant 0 : index
    %c0_18 = arith.constant 0 : index
    %24 = vector.load %arg1[%c2, %c0_17, %c0_18] : memref<8x8x128xf32, #tpu.memory_space<vmem>>, vector<1x8x128xf32>
    %25 = vector.shape_cast %24 : vector<1x8x128xf32> to vector<8x128xf32>
    %c0_19 = arith.constant 0 : index
    %c0_20 = arith.constant 0 : index
    %26 = vector.load %arg2[%c0_19, %c0_20] : memref<128x128xf32, #tpu.memory_space<vmem>>, vector<128x128xf32>
    %cst_21 = arith.constant dense<0.000000e+00> : vector<8x128xf32>
    %27 = tpu.matmul %18, %26, %cst_21 {dimension_numbers = #tpu.dot_dimension_numbers<[1], [0], [0], [1], [0, 0, 1, 1], [], []>} : vector<8x128xf32>, vector<128x128xf32>, vector<8x128xf32> -> vector<8x128xf32>
    %28 = arith.addf %25, %27 : vector<8x128xf32>
    %29 = math.tanh %28 : vector<8x128xf32>
    %30 = tpu.concatenate %18, %23 in 1 : vector<8x128xf32>, vector<8x128xf32> -> vector<8x256xf32>
    %c0_22 = arith.constant 0 : index
    %c0_23 = arith.constant 0 : index
    %31 = vector.load %arg3[%c0_22, %c0_23] : memref<256x128xf32, #tpu.memory_space<vmem>>, vector<256x128xf32>
    %cst_24 = arith.constant dense<0.000000e+00> : vector<8x128xf32>
    %32 = tpu.matmul %30, %31, %cst_24 {dimension_numbers = #tpu.dot_dimension_numbers<[1], [0], [0], [1], [0, 0, 1, 1], [], []>} : vector<8x256xf32>, vector<256x128xf32>, vector<8x128xf32> -> vector<8x128xf32>
    %33 = arith.addf %32, %2 : vector<8x128xf32>
    %34 = math.tanh %33 : vector<8x128xf32>
    %35 = tpu.concatenate %23, %6 in 1 : vector<8x128xf32>, vector<8x128xf32> -> vector<8x256xf32>
    %c0_25 = arith.constant 0 : index
    %c0_26 = arith.constant 0 : index
    %36 = vector.load %arg5[%c0_25, %c0_26] : memref<256x128xf32, #tpu.memory_space<vmem>>, vector<256x128xf32>
    %cst_27 = arith.constant dense<0.000000e+00> : vector<8x128xf32>
    %37 = tpu.matmul %35, %36, %cst_27 {dimension_numbers = #tpu.dot_dimension_numbers<[1], [0], [0], [1], [0, 0, 1, 1], [], []>} : vector<8x256xf32>, vector<256x128xf32>, vector<8x128xf32> -> vector<8x128xf32>
    %38 = arith.addf %37, %5 : vector<8x128xf32>
    %39 = math.tanh %38 : vector<8x128xf32>
    %40 = math.tanh %39 : vector<8x128xf32>
    %41 = arith.addf %6, %40 : vector<8x128xf32>
    %c3 = arith.constant 3 : index
    %c0_28 = arith.constant 0 : index
    %c0_29 = arith.constant 0 : index
    %42 = vector.load %arg1[%c3, %c0_28, %c0_29] : memref<8x8x128xf32, #tpu.memory_space<vmem>>, vector<1x8x128xf32>
    %43 = vector.shape_cast %42 : vector<1x8x128xf32> to vector<8x128xf32>
    %c0_30 = arith.constant 0 : index
    %c0_31 = arith.constant 0 : index
    %44 = vector.load %arg2[%c0_30, %c0_31] : memref<128x128xf32, #tpu.memory_space<vmem>>, vector<128x128xf32>
    %cst_32 = arith.constant dense<0.000000e+00> : vector<8x128xf32>
    %45 = tpu.matmul %29, %44, %cst_32 {dimension_numbers = #tpu.dot_dimension_numbers<[1], [0], [0], [1], [0, 0, 1, 1], [], []>} : vector<8x128xf32>, vector<128x128xf32>, vector<8x128xf32> -> vector<8x128xf32>
    %46 = arith.addf %43, %45 : vector<8x128xf32>
    %47 = math.tanh %46 : vector<8x128xf32>
    %48 = tpu.concatenate %29, %34 in 1 : vector<8x128xf32>, vector<8x128xf32> -> vector<8x256xf32>
    %c0_33 = arith.constant 0 : index
    %c0_34 = arith.constant 0 : index
    %49 = vector.load %arg3[%c0_33, %c0_34] : memref<256x128xf32, #tpu.memory_space<vmem>>, vector<256x128xf32>
    %cst_35 = arith.constant dense<0.000000e+00> : vector<8x128xf32>
    %50 = tpu.matmul %48, %49, %cst_35 {dimension_numbers = #tpu.dot_dimension_numbers<[1], [0], [0], [1], [0, 0, 1, 1], [], []>} : vector<8x256xf32>, vector<256x128xf32>, vector<8x128xf32> -> vector<8x128xf32>
    %51 = arith.addf %50, %2 : vector<8x128xf32>
    %52 = math.tanh %51 : vector<8x128xf32>
    %53 = tpu.concatenate %34, %39 in 1 : vector<8x128xf32>, vector<8x128xf32> -> vector<8x256xf32>
    %c0_36 = arith.constant 0 : index
    %c0_37 = arith.constant 0 : index
    %54 = vector.load %arg5[%c0_36, %c0_37] : memref<256x128xf32, #tpu.memory_space<vmem>>, vector<256x128xf32>
    %cst_38 = arith.constant dense<0.000000e+00> : vector<8x128xf32>
    %55 = tpu.matmul %53, %54, %cst_38 {dimension_numbers = #tpu.dot_dimension_numbers<[1], [0], [0], [1], [0, 0, 1, 1], [], []>} : vector<8x256xf32>, vector<256x128xf32>, vector<8x128xf32> -> vector<8x128xf32>
    %56 = arith.addf %55, %5 : vector<8x128xf32>
    %57 = math.tanh %56 : vector<8x128xf32>
    %58 = math.tanh %57 : vector<8x128xf32>
    %59 = arith.addf %41, %58 : vector<8x128xf32>
    %c4 = arith.constant 4 : index
    %c0_39 = arith.constant 0 : index
    %c0_40 = arith.constant 0 : index
    %60 = vector.load %arg1[%c4, %c0_39, %c0_40] : memref<8x8x128xf32, #tpu.memory_space<vmem>>, vector<1x8x128xf32>
    %61 = vector.shape_cast %60 : vector<1x8x128xf32> to vector<8x128xf32>
    %c0_41 = arith.constant 0 : index
    %c0_42 = arith.constant 0 : index
    %62 = vector.load %arg2[%c0_41, %c0_42] : memref<128x128xf32, #tpu.memory_space<vmem>>, vector<128x128xf32>
    %cst_43 = arith.constant dense<0.000000e+00> : vector<8x128xf32>
    %63 = tpu.matmul %47, %62, %cst_43 {dimension_numbers = #tpu.dot_dimension_numbers<[1], [0], [0], [1], [0, 0, 1, 1], [], []>} : vector<8x128xf32>, vector<128x128xf32>, vector<8x128xf32> -> vector<8x128xf32>
    %64 = arith.addf %61, %63 : vector<8x128xf32>
    %65 = math.tanh %64 : vector<8x128xf32>
    %66 = tpu.concatenate %47, %52 in 1 : vector<8x128xf32>, vector<8x128xf32> -> vector<8x256xf32>
    %c0_44 = arith.constant 0 : index
    %c0_45 = arith.constant 0 : index
    %67 = vector.load %arg3[%c0_44, %c0_45] : memref<256x128xf32, #tpu.memory_space<vmem>>, vector<256x128xf32>
    %cst_46 = arith.constant dense<0.000000e+00> : vector<8x128xf32>
    %68 = tpu.matmul %66, %67, %cst_46 {dimension_numbers = #tpu.dot_dimension_numbers<[1], [0], [0], [1], [0, 0, 1, 1], [], []>} : vector<8x256xf32>, vector<256x128xf32>, vector<8x128xf32> -> vector<8x128xf32>
    %69 = arith.addf %68, %2 : vector<8x128xf32>
    %70 = math.tanh %69 : vector<8x128xf32>
    %71 = tpu.concatenate %52, %57 in 1 : vector<8x128xf32>, vector<8x128xf32> -> vector<8x256xf32>
    %c0_47 = arith.constant 0 : index
    %c0_48 = arith.constant 0 : index
    %72 = vector.load %arg5[%c0_47, %c0_48] : memref<256x128xf32, #tpu.memory_space<vmem>>, vector<256x128xf32>
    %cst_49 = arith.constant dense<0.000000e+00> : vector<8x128xf32>
    %73 = tpu.matmul %71, %72, %cst_49 {dimension_numbers = #tpu.dot_dimension_numbers<[1], [0], [0], [1], [0, 0, 1, 1], [], []>} : vector<8x256xf32>, vector<256x128xf32>, vector<8x128xf32> -> vector<8x128xf32>
    %74 = arith.addf %73, %5 : vector<8x128xf32>
    %75 = math.tanh %74 : vector<8x128xf32>
    %76 = math.tanh %75 : vector<8x128xf32>
    %77 = arith.addf %59, %76 : vector<8x128xf32>
    %c5 = arith.constant 5 : index
    %c0_50 = arith.constant 0 : index
    %c0_51 = arith.constant 0 : index
    %78 = vector.load %arg1[%c5, %c0_50, %c0_51] : memref<8x8x128xf32, #tpu.memory_space<vmem>>, vector<1x8x128xf32>
    %79 = vector.shape_cast %78 : vector<1x8x128xf32> to vector<8x128xf32>
    %c0_52 = arith.constant 0 : index
    %c0_53 = arith.constant 0 : index
    %80 = vector.load %arg2[%c0_52, %c0_53] : memref<128x128xf32, #tpu.memory_space<vmem>>, vector<128x128xf32>
    %cst_54 = arith.constant dense<0.000000e+00> : vector<8x128xf32>
    %81 = tpu.matmul %65, %80, %cst_54 {dimension_numbers = #tpu.dot_dimension_numbers<[1], [0], [0], [1], [0, 0, 1, 1], [], []>} : vector<8x128xf32>, vector<128x128xf32>, vector<8x128xf32> -> vector<8x128xf32>
    %82 = arith.addf %79, %81 : vector<8x128xf32>
    %83 = math.tanh %82 : vector<8x128xf32>
    %84 = tpu.concatenate %65, %70 in 1 : vector<8x128xf32>, vector<8x128xf32> -> vector<8x256xf32>
    %c0_55 = arith.constant 0 : index
    %c0_56 = arith.constant 0 : index
    %85 = vector.load %arg3[%c0_55, %c0_56] : memref<256x128xf32, #tpu.memory_space<vmem>>, vector<256x128xf32>
    %cst_57 = arith.constant dense<0.000000e+00> : vector<8x128xf32>
    %86 = tpu.matmul %84, %85, %cst_57 {dimension_numbers = #tpu.dot_dimension_numbers<[1], [0], [0], [1], [0, 0, 1, 1], [], []>} : vector<8x256xf32>, vector<256x128xf32>, vector<8x128xf32> -> vector<8x128xf32>
    %87 = arith.addf %86, %2 : vector<8x128xf32>
    %88 = math.tanh %87 : vector<8x128xf32>
    %89 = tpu.concatenate %70, %75 in 1 : vector<8x128xf32>, vector<8x128xf32> -> vector<8x256xf32>
    %c0_58 = arith.constant 0 : index
    %c0_59 = arith.constant 0 : index
    %90 = vector.load %arg5[%c0_58, %c0_59] : memref<256x128xf32, #tpu.memory_space<vmem>>, vector<256x128xf32>
    %cst_60 = arith.constant dense<0.000000e+00> : vector<8x128xf32>
    %91 = tpu.matmul %89, %90, %cst_60 {dimension_numbers = #tpu.dot_dimension_numbers<[1], [0], [0], [1], [0, 0, 1, 1], [], []>} : vector<8x256xf32>, vector<256x128xf32>, vector<8x128xf32> -> vector<8x128xf32>
    %92 = arith.addf %91, %5 : vector<8x128xf32>
    %93 = math.tanh %92 : vector<8x128xf32>
    %94 = math.tanh %93 : vector<8x128xf32>
    %95 = arith.addf %77, %94 : vector<8x128xf32>
    %c6 = arith.constant 6 : index
    %c0_61 = arith.constant 0 : index
    %c0_62 = arith.constant 0 : index
    %96 = vector.load %arg1[%c6, %c0_61, %c0_62] : memref<8x8x128xf32, #tpu.memory_space<vmem>>, vector<1x8x128xf32>
    %97 = vector.shape_cast %96 : vector<1x8x128xf32> to vector<8x128xf32>
    %c0_63 = arith.constant 0 : index
    %c0_64 = arith.constant 0 : index
    %98 = vector.load %arg2[%c0_63, %c0_64] : memref<128x128xf32, #tpu.memory_space<vmem>>, vector<128x128xf32>
    %cst_65 = arith.constant dense<0.000000e+00> : vector<8x128xf32>
    %99 = tpu.matmul %83, %98, %cst_65 {dimension_numbers = #tpu.dot_dimension_numbers<[1], [0], [0], [1], [0, 0, 1, 1], [], []>} : vector<8x128xf32>, vector<128x128xf32>, vector<8x128xf32> -> vector<8x128xf32>
    %100 = arith.addf %97, %99 : vector<8x128xf32>
    %101 = math.tanh %100 : vector<8x128xf32>
    %102 = tpu.concatenate %83, %88 in 1 : vector<8x128xf32>, vector<8x128xf32> -> vector<8x256xf32>
    %c0_66 = arith.constant 0 : index
    %c0_67 = arith.constant 0 : index
    %103 = vector.load %arg3[%c0_66, %c0_67] : memref<256x128xf32, #tpu.memory_space<vmem>>, vector<256x128xf32>
    %cst_68 = arith.constant dense<0.000000e+00> : vector<8x128xf32>
    %104 = tpu.matmul %102, %103, %cst_68 {dimension_numbers = #tpu.dot_dimension_numbers<[1], [0], [0], [1], [0, 0, 1, 1], [], []>} : vector<8x256xf32>, vector<256x128xf32>, vector<8x128xf32> -> vector<8x128xf32>
    %105 = arith.addf %104, %2 : vector<8x128xf32>
    %106 = math.tanh %105 : vector<8x128xf32>
    %107 = tpu.concatenate %88, %93 in 1 : vector<8x128xf32>, vector<8x128xf32> -> vector<8x256xf32>
    %c0_69 = arith.constant 0 : index
    %c0_70 = arith.constant 0 : index
    %108 = vector.load %arg5[%c0_69, %c0_70] : memref<256x128xf32, #tpu.memory_space<vmem>>, vector<256x128xf32>
    %cst_71 = arith.constant dense<0.000000e+00> : vector<8x128xf32>
    %109 = tpu.matmul %107, %108, %cst_71 {dimension_numbers = #tpu.dot_dimension_numbers<[1], [0], [0], [1], [0, 0, 1, 1], [], []>} : vector<8x256xf32>, vector<256x128xf32>, vector<8x128xf32> -> vector<8x128xf32>
    %110 = arith.addf %109, %5 : vector<8x128xf32>
    %111 = math.tanh %110 : vector<8x128xf32>
    %112 = math.tanh %111 : vector<8x128xf32>
    %113 = arith.addf %95, %112 : vector<8x128xf32>
    %c7 = arith.constant 7 : index
    %c0_72 = arith.constant 0 : index
    %c0_73 = arith.constant 0 : index
    %114 = vector.load %arg1[%c7, %c0_72, %c0_73] : memref<8x8x128xf32, #tpu.memory_space<vmem>>, vector<1x8x128xf32>
    %115 = vector.shape_cast %114 : vector<1x8x128xf32> to vector<8x128xf32>
    %c0_74 = arith.constant 0 : index
    %c0_75 = arith.constant 0 : index
    %116 = vector.load %arg2[%c0_74, %c0_75] : memref<128x128xf32, #tpu.memory_space<vmem>>, vector<128x128xf32>
    %cst_76 = arith.constant dense<0.000000e+00> : vector<8x128xf32>
    %117 = tpu.matmul %101, %116, %cst_76 {dimension_numbers = #tpu.dot_dimension_numbers<[1], [0], [0], [1], [0, 0, 1, 1], [], []>} : vector<8x128xf32>, vector<128x128xf32>, vector<8x128xf32> -> vector<8x128xf32>
    %118 = arith.addf %115, %117 : vector<8x128xf32>
    %119 = math.tanh %118 : vector<8x128xf32>
    %120 = tpu.concatenate %101, %106 in 1 : vector<8x128xf32>, vector<8x128xf32> -> vector<8x256xf32>
    %c0_77 = arith.constant 0 : index
    %c0_78 = arith.constant 0 : index
    %121 = vector.load %arg3[%c0_77, %c0_78] : memref<256x128xf32, #tpu.memory_space<vmem>>, vector<256x128xf32>
    %cst_79 = arith.constant dense<0.000000e+00> : vector<8x128xf32>
    %122 = tpu.matmul %120, %121, %cst_79 {dimension_numbers = #tpu.dot_dimension_numbers<[1], [0], [0], [1], [0, 0, 1, 1], [], []>} : vector<8x256xf32>, vector<256x128xf32>, vector<8x128xf32> -> vector<8x128xf32>
    %123 = arith.addf %122, %2 : vector<8x128xf32>
    %124 = math.tanh %123 : vector<8x128xf32>
    %125 = tpu.concatenate %106, %111 in 1 : vector<8x128xf32>, vector<8x128xf32> -> vector<8x256xf32>
    %c0_80 = arith.constant 0 : index
    %c0_81 = arith.constant 0 : index
    %126 = vector.load %arg5[%c0_80, %c0_81] : memref<256x128xf32, #tpu.memory_space<vmem>>, vector<256x128xf32>
    %cst_82 = arith.constant dense<0.000000e+00> : vector<8x128xf32>
    %127 = tpu.matmul %125, %126, %cst_82 {dimension_numbers = #tpu.dot_dimension_numbers<[1], [0], [0], [1], [0, 0, 1, 1], [], []>} : vector<8x256xf32>, vector<256x128xf32>, vector<8x128xf32> -> vector<8x128xf32>
    %128 = arith.addf %127, %5 : vector<8x128xf32>
    %129 = math.tanh %128 : vector<8x128xf32>
    %130 = math.tanh %129 : vector<8x128xf32>
    %131 = arith.addf %113, %130 : vector<8x128xf32>
    %132 = tpu.concatenate %119, %124 in 1 : vector<8x128xf32>, vector<8x128xf32> -> vector<8x256xf32>
    %c0_83 = arith.constant 0 : index
    %c0_84 = arith.constant 0 : index
    %133 = vector.load %arg3[%c0_83, %c0_84] : memref<256x128xf32, #tpu.memory_space<vmem>>, vector<256x128xf32>
    %cst_85 = arith.constant dense<0.000000e+00> : vector<8x128xf32>
    %134 = tpu.matmul %132, %133, %cst_85 {dimension_numbers = #tpu.dot_dimension_numbers<[1], [0], [0], [1], [0, 0, 1, 1], [], []>} : vector<8x256xf32>, vector<256x128xf32>, vector<8x128xf32> -> vector<8x128xf32>
    %135 = arith.addf %134, %2 : vector<8x128xf32>
    %136 = math.tanh %135 : vector<8x128xf32>
    %137 = tpu.concatenate %124, %129 in 1 : vector<8x128xf32>, vector<8x128xf32> -> vector<8x256xf32>
    %c0_86 = arith.constant 0 : index
    %c0_87 = arith.constant 0 : index
    %138 = vector.load %arg5[%c0_86, %c0_87] : memref<256x128xf32, #tpu.memory_space<vmem>>, vector<256x128xf32>
    %cst_88 = arith.constant dense<0.000000e+00> : vector<8x128xf32>
    %139 = tpu.matmul %137, %138, %cst_88 {dimension_numbers = #tpu.dot_dimension_numbers<[1], [0], [0], [1], [0, 0, 1, 1], [], []>} : vector<8x256xf32>, vector<256x128xf32>, vector<8x128xf32> -> vector<8x128xf32>
    %140 = arith.addf %139, %5 : vector<8x128xf32>
    %141 = math.tanh %140 : vector<8x128xf32>
    %142 = math.tanh %141 : vector<8x128xf32>
    %143 = arith.addf %131, %142 : vector<8x128xf32>
    %144 = tpu.concatenate %136, %141 in 1 : vector<8x128xf32>, vector<8x128xf32> -> vector<8x256xf32>
    %c0_89 = arith.constant 0 : index
    %c0_90 = arith.constant 0 : index
    %145 = vector.load %arg5[%c0_89, %c0_90] : memref<256x128xf32, #tpu.memory_space<vmem>>, vector<256x128xf32>
    %cst_91 = arith.constant dense<0.000000e+00> : vector<8x128xf32>
    %146 = tpu.matmul %144, %145, %cst_91 {dimension_numbers = #tpu.dot_dimension_numbers<[1], [0], [0], [1], [0, 0, 1, 1], [], []>} : vector<8x256xf32>, vector<256x128xf32>, vector<8x128xf32> -> vector<8x128xf32>
    %147 = arith.addf %146, %5 : vector<8x128xf32>
    %148 = math.tanh %147 : vector<8x128xf32>
    %149 = math.tanh %148 : vector<8x128xf32>
    %150 = arith.addf %143, %149 : vector<8x128xf32>
    %cst_92 = arith.constant 1.250000e-01 : f32
    %151 = vector.broadcast %cst_92 : f32 to vector<8x128xf32>
    %152 = arith.mulf %150, %151 : vector<8x128xf32>
    %c0_93 = arith.constant 0 : index
    %c0_94 = arith.constant 0 : index
    %153 = vector.load %arg7[%c0_93, %c0_94] : memref<128x128xf32, #tpu.memory_space<vmem>>, vector<128x128xf32>
    %cst_95 = arith.constant dense<0.000000e+00> : vector<8x128xf32>
    %154 = tpu.matmul %152, %153, %cst_95 {dimension_numbers = #tpu.dot_dimension_numbers<[1], [0], [0], [1], [0, 0, 1, 1], [], []>} : vector<8x128xf32>, vector<128x128xf32>, vector<8x128xf32> -> vector<8x128xf32>
    %c0_96 = arith.constant 0 : index
    %c0_97 = arith.constant 0 : index
    %155 = vector.load %arg8[%c0_96, %c0_97] : memref<1x128xf32, #tpu.memory_space<vmem>>, vector<1x128xf32>
    %156 = vector.broadcast %155 : vector<1x128xf32> to vector<8x128xf32>
    %157 = arith.addf %154, %156 : vector<8x128xf32>
    %c0_98 = arith.constant 0 : index
    %c0_99 = arith.constant 0 : index
    %158 = vector.load %arg9[%c0_98, %c0_99] : memref<8x128xf32, #tpu.memory_space<vmem>>, vector<8x128xf32>
    tpu.vector_store %arg9[%c0_98, %c0_99], %157 {strides = array<i32>} : memref<8x128xf32, #tpu.memory_space<vmem>>, vector<8x128xf32>,
    return
  }
  func.func @transform_0(%arg0: i32) -> (i32, i32, i32) {
    %c0_i32 = arith.constant 0 : i32
    %c0_i32_0 = arith.constant 0 : i32
    %c0_i32_1 = arith.constant 0 : i32
    return %c0_i32, %arg0, %c0_i32_0 : i32, i32, i32
  }
  func.func @transform_1(%arg0: i32) -> (i32, i32) {
    %c0_i32 = arith.constant 0 : i32
    %c0_i32_0 = arith.constant 0 : i32
    %c0_i32_1 = arith.constant 0 : i32
    return %c0_i32, %c0_i32_0 : i32, i32
  }
  func.func @transform_2(%arg0: i32) -> (i32, i32) {
    %c0_i32 = arith.constant 0 : i32
    %c0_i32_0 = arith.constant 0 : i32
    %c0_i32_1 = arith.constant 0 : i32
    return %c0_i32, %c0_i32_0 : i32, i32
  }
  func.func @transform_3(%arg0: i32) -> (i32, i32) {
    %c0_i32 = arith.constant 0 : i32
    %c0_i32_0 = arith.constant 0 : i32
    %c0_i32_1 = arith.constant 0 : i32
    return %c0_i32, %c0_i32_0 : i32, i32
  }
  func.func @transform_4(%arg0: i32) -> (i32, i32) {
    %c0_i32 = arith.constant 0 : i32
    %c0_i32_0 = arith.constant 0 : i32
    %c0_i32_1 = arith.constant 0 : i32
    return %c0_i32, %c0_i32_0 : i32, i32
  }
  func.func @transform_5(%arg0: i32) -> (i32, i32) {
    %c0_i32 = arith.constant 0 : i32
    %c0_i32_0 = arith.constant 0 : i32
    %c0_i32_1 = arith.constant 0 : i32
    return %c0_i32, %c0_i32_0 : i32, i32
  }
  func.func @transform_6(%arg0: i32) -> (i32, i32) {
    %c0_i32 = arith.constant 0 : i32
    %c0_i32_0 = arith.constant 0 : i32
    %c0_i32_1 = arith.constant 0 : i32
    return %c0_i32, %c0_i32_0 : i32, i32
  }
  func.func @transform_7(%arg0: i32) -> (i32, i32) {
    %c0_i32 = arith.constant 0 : i32
    %c0_i32_0 = arith.constant 0 : i32
    %c0_i32_1 = arith.constant 0 : i32
    return %c0_i32, %c0_i32_0 : i32, i32
  }
  func.func @transform_8(%arg0: i32) -> (i32, i32) {
    %c0_i32 = arith.constant 0 : i32
    %c0_i32_0 = arith.constant 0 : i32
    return %arg0, %c0_i32 : i32, i32
  }
}

</mosaic_0001>

<bundles_post_ra>
// kernel: tpu_custom_call.1
= control target key start
LH: loop header
LB: loop body
LE: loop exit
PB: predicated region body
PF: predicated region fallthrough
CT: control target
= control target key end

     0   :  { %13 = vsyncpa [#allocation3], 0  ;;  %s2446_s0 = inlined_call_operand.hbm [shape: f32[8,8,128], index: 0, kind: input, shape index: {}]   ;;  %s2447_s1 = inlined_call_operand.hbm [shape: f32[128,128], index: 1, kind: input, shape index: {}]   ;;  %s2448_s2 = inlined_call_operand.hbm [shape: f32[256,128], index: 2, kind: input, shape index: {}]   ;;  %s2449_s3 = inlined_call_operand.vmem [shape: f32[1,128], index: 3, kind: input, shape index: {}]   ;;  %s2450_s4 = inlined_call_operand.hbm [shape: f32[256,128], index: 4, kind: input, shape index: {}]   ;;  %s2451_s5 = inlined_call_operand.vmem [shape: f32[1,128], index: 5, kind: input, shape index: {}]   ;;  %s2452_s6 = inlined_call_operand.hbm [shape: f32[128,128], index: 6, kind: input, shape index: {}]   ;;  %s2453_s7 = inlined_call_operand.vmem [shape: f32[1,128], index: 7, kind: input, shape index: {}]   ;;  %s2454_s8 = inlined_call_operand.hbm [shape: f32[8,128], index: 8, kind: output, shape index: {}]  }
   0x1   :  { %14 = vsyncpa [#allocation6], 0 }
   0x2   :  { %15 = vsyncpa [#allocation9], 0 }
   0x3   :  { %16 = vsyncpa [#allocation4], 0  ;;  %s34_s29 = sshll.u32 %s2447_s1, 4  ;;  %s1430_s30 = smov [#allocation5]   ;;  %s35_s29 = int_to_ptr.hbm [resolvable:$true] %s34_s29 }
   0x4   :  { %s36_s9 = sshll.u32 %s1430_s30, 4  ;;  %s62_s12 = sshll.u32 %s2450_s4, 4  ;;  %s37_s9 = int_to_ptr.vmem [resolvable:$true] %s36_s9  ;;  %s63_s12 = int_to_ptr.hbm [resolvable:$true] %s62_s12 }
   0x5   :  { %s1431_s13 = smov 128   ;;  %s1432_s14 = smov 8  }
   0x6   :  { %42 = dma.hbm_to_vmem [thread:$0]  %s35_s29, 2048, %s37_s9, [#allocation6], %s1431_s13, %s1431_s13, %s1432_s14  }
   0x7   :  { %s1433_s15 = smov [#allocation8]   ;;  %s21_s19 = sshll.u32 %s2446_s0, 4  ;;  %s22_s19 = int_to_ptr.hbm [resolvable:$true] %s21_s19 }
   0x8   :  { %s64_s16 = sshll.u32 %s1433_s15, 4  ;;  %s47_s21 = sshll.u32 %s2448_s2, 4  ;;  %s65_s16 = int_to_ptr.vmem [resolvable:$true] %s64_s16  ;;  %s48_s21 = int_to_ptr.hbm [resolvable:$true] %s47_s21 }
   0x9   :  { %70 = dma.hbm_to_vmem [thread:$0]  %s63_s12, 4096, %s65_s16, [#allocation9], %s1431_s13, %s1431_s13, %s1432_s14  }
   0xa   :  { %s1434_s22 = smov [#allocation2]   ;;  %s1435_s4 = smov [#allocation7]  }
   0xb   :  { %s23_s23 = sshll.u32 %s1434_s22, 4  ;;  %s49_s24 = sshll.u32 %s1435_s4, 4  ;;  %s24_s23 = int_to_ptr.vmem [resolvable:$true] %s23_s23  ;;  %s50_s24 = int_to_ptr.vmem [resolvable:$true] %s49_s24 }
   0xc   :  { %29 = dma.hbm_to_vmem [thread:$0]  %s22_s19, 1024, %s24_s23, [#allocation3], %s1431_s13, %s1431_s13, %s1432_s14  }
   0xd   :  { %s77_s27 = sshll.u32 %s2452_s6, 4  ;;  %s1436_s0 = smov [#allocation10]   ;;  %s78_s27 = int_to_ptr.hbm [resolvable:$true] %s77_s27 }
   0xe   :  { %55 = dma.hbm_to_vmem [thread:$0]  %s48_s21, 4096, %s50_s24, [#allocation6], %s1431_s13, %s1431_s13, %s1432_s14  }
   0xf   :  { %s79_s28 = sshll.u32 %s1436_s0, 4  ;;  %s80_s28 = int_to_ptr.vmem [resolvable:$true] %s79_s28 }
  0x10   :  { %85 = dma.hbm_to_vmem [thread:$0]  %s78_s27, 2048, %s80_s28, [#allocation9], %s1431_s13, %s1431_s13, %s1432_s14  }
  0x11   :  { %1422 = dma.done.wait [#allocation3], 1024  }
  0x12   :  { %1423 = vsyncadd [#allocation3], 4294966272 }
  0x13   :  { %1424 = dma.done.wait [#allocation6], 6144  }
  0x14   :  { %1425 = vsyncadd [#allocation6], 4294961152 }
  0x15   :  { %1426 = dma.done.wait [#allocation9], 6144  }
  0x16   :  { %1427 = vsyncadd [#allocation9], 4294961152  ;;  %v1499_v0 = vld [vmem:[#allocation5 + $0x78] sm:$0xff]  ;;  %v1501_v1 = vld [vmem:[#allocation5 + $0x70] sm:$0xff]  ;;  %v2455_v37 = vmov 0.0   ;;  %s1438_s13 = smov [#allocation11]  }
  0x17   :  { %133 = vmatpush.msra.mxu0 %v1499_v0  ;;  %157 = vmatpush.msra.mxu1 %v1499_v0  ;;  %v1505_v2 = vld [vmem:[#allocation5 + $0x68] sm:$0xff]  ;;  %v1509_v3 = vld [vmem:[#allocation5 + $0x60] sm:$0xff]  ;;  %v1512_v4 = vld [vmem:[#allocation7 + $0x78] sm:$0xff]  ;;  %s1106_s14 = sshll.u32 %s1438_s13, 4  ;;  %s1108_s17 = sshll.u32 %s2454_s8, 4  ;;  %s1107_s14 = int_to_ptr.vmem [resolvable:$true] %s1106_s14  ;;  %s1109_s17 = int_to_ptr.hbm [resolvable:$true] %s1108_s17 }
  0x18   :  { %v1514_v5 = vld [vmem:[#allocation7 + $0x70] sm:$0xff]  ;;  %v1517_v6 = vld [vmem:[#allocation5 + $0x58] sm:$0xff]  ;;  %211 = vmatpush.msra.mxu2 %v1512_v4  ;;  %v1526_v9 = vld [vmem:[#allocation7 + $0x68] sm:$0xff] }
  0x19   :  { %134 = vmatpush.msra.mxu0 %v1501_v1  ;;  %158 = vmatpush.msra.mxu1 %v1501_v1  ;;  %v1520_v7 = vld [vmem:[#allocation7 + $0xf8] sm:$0xff]  ;;  %v1522_v8 = vld [vmem:[#allocation7 + $0xf0] sm:$0xff]  ;;  %v1532_v11 = vld [vmem:[#allocation7 + $0xe8] sm:$0xff] }
  0x1a   :  { %2546 = vst [vmem:[#allocation16_spill] sm:$0xff] %v1520_v7  ;;  %231 = vmatpush.msra.mxu3 %v1520_v7  ;;  %v1528_v10 = vld [vmem:[#allocation5 + $0x50] sm:$0xff]  ;;  %212 = vmatpush.msra.mxu2 %v1514_v5  ;;  %v1536_v12 = vld [vmem:[#allocation7 + $0x60] sm:$0xff]  ;;  %v1538_v13 = vld [vmem:[#allocation5 + $0x48] sm:$0xff] }
  0x1b   :  { %135 = vmatpush.msra.mxu0 %v1505_v2  ;;  %159 = vmatpush.msra.mxu1 %v1505_v2  ;;  %2547 = vst [vmem:[#allocation17_spill] sm:$0xff] %v1522_v8  ;;  %v1542_v14 = vld [vmem:[#allocation7 + $0xe0] sm:$0xff]  ;;  %v1546_v15 = vld [vmem:[#allocation7 + $0x58] sm:$0xff]  ;;  %v1556_v18 = vld [vmem:[#allocation7 + $0x50] sm:$0xff] }
  0x1c   :  { %2548 = vst [vmem:[#allocation18_spill] sm:$0xff] %v1532_v11  ;;  %232 = vmatpush.msra.mxu3 %v1522_v8  ;;  %213 = vmatpush.msra.mxu2 %v1526_v9  ;;  %v1548_v16 = vld [vmem:[#allocation5 + $0x40] sm:$0xff]  ;;  %v1552_v17 = vld [vmem:[#allocation7 + $0xd8] sm:$0xff]  ;;  %v1562_v20 = vld [vmem:[#allocation7 + $0xd0] sm:$0xff] }
  0x1d   :  { %136 = vmatpush.msra.mxu0 %v1509_v3  ;;  %160 = vmatpush.msra.mxu1 %v1509_v3  ;;  %2549 = vst [vmem:[#allocation19_spill] sm:$0xff] %v1542_v14  ;;  %v1558_v19 = vld [vmem:[#allocation5 + $0x38] sm:$0xff]  ;;  %v1566_v21 = vld [vmem:[#allocation7 + $0x48] sm:$0xff]  ;;  %v1568_v22 = vld [vmem:[#allocation5 + $0x30] sm:$0xff] }
  0x1e   :  { %233 = vmatpush.msra.mxu3 %v1532_v11  ;;  %2550 = vst [vmem:[#allocation20_spill] sm:$0xff] %v1548_v16  ;;  %214 = vmatpush.msra.mxu2 %v1536_v12  ;;  %v1572_v23 = vld [vmem:[#allocation7 + $0xc8] sm:$0xff]  ;;  %v1576_v24 = vld [vmem:[#allocation7 + $0x40] sm:$0xff]  ;;  %v1586_v27 = vld [vmem:[#allocation7 + $0x38] sm:$0xff] }
  0x1f   :  { %137 = vmatpush.msra.mxu0 %v1517_v6  ;;  %161 = vmatpush.msra.mxu1 %v1517_v6  ;;  %2551 = vst [vmem:[#allocation21_spill] sm:$0xff] %v1552_v17  ;;  %v1578_v25 = vld [vmem:[#allocation5 + $0x28] sm:$0xff]  ;;  %v1582_v26 = vld [vmem:[#allocation7 + $0xc0] sm:$0xff]  ;;  %v1592_v29 = vld [vmem:[#allocation7 + $0xb8] sm:$0xff] }
  0x20   :  { %234 = vmatpush.msra.mxu3 %v1542_v14  ;;  %2552 = vst [vmem:[#allocation22_spill] sm:$0xff] %v1558_v19  ;;  %215 = vmatpush.msra.mxu2 %v1546_v15  ;;  %v1588_v28 = vld [vmem:[#allocation5 + $0x20] sm:$0xff]  ;;  %v1596_v30 = vld [vmem:[#allocation7 + $0x30] sm:$0xff]  ;;  %v1598_v31 = vld [vmem:[#allocation5 + $0x18] sm:$0xff] }
  0x21   :  { %138 = vmatpush.msra.mxu0 %v1528_v10  ;;  %162 = vmatpush.msra.mxu1 %v1528_v10  ;;  %2553 = vst [vmem:[#allocation23_spill] sm:$0xff] %v1566_v21  ;;  %v1602_v32 = vld [vmem:[#allocation7 + $0xb0] sm:$0xff]  ;;  %v1606_v33 = vld [vmem:[#allocation7 + $0x28] sm:$0xff]  ;;  %v1619_v36 = vld [vmem:[#allocation5] sm:$0xff] }
  0x22   :  { %235 = vmatpush.msra.mxu3 %v1552_v17  ;;  %2554 = vst [vmem:[#allocation24_spill] sm:$0xff] %v1568_v22  ;;  %216 = vmatpush.msra.mxu2 %v1556_v18  ;;  %v1608_v34 = vld [vmem:[#allocation5 + $0x10] sm:$0xff]  ;;  %v1614_v35 = vld [vmem:[#allocation5 + $0x8] sm:$0xff]  ;;  %v1654_v38 = vld [vmem:[#allocation7 + $0x20] sm:$0xff] }
  0x23   :  { %139 = vmatpush.msra.mxu0 %v1538_v13  ;;  %163 = vmatpush.msra.mxu1 %v1538_v13  ;;  %2555 = vst [vmem:[#allocation25_spill] sm:$0xff] %v1572_v23  ;;  %v1656_v39 = vld [vmem:[#allocation7 + $0xa8] sm:$0xff]  ;;  %v1660_v40 = vld [vmem:[#allocation7 + $0x18] sm:$0xff]  ;;  %v1662_v41 = vld [vmem:[#allocation7 + $0xa0] sm:$0xff] }
  0x24   :  { %236 = vmatpush.msra.mxu3 %v1562_v20  ;;  %2556 = vst [vmem:[#allocation26_spill] sm:$0xff] %v1576_v24  ;;  %217 = vmatpush.msra.mxu2 %v1566_v21  ;;  %v1667_v42 = vld [vmem:[#allocation7 + $0x10] sm:$0xff]  ;;  %v1669_v43 = vld [vmem:[#allocation7 + $0x98] sm:$0xff]  ;;  %v1671_v44 = vld [vmem:[#allocation7 + $0x8] sm:$0xff] }
  0x25   :  { %140 = vmatpush.msra.mxu0 %v1548_v16  ;;  %164 = vmatpush.msra.mxu1 %v1548_v16  ;;  %2557 = vst [vmem:[#allocation27_spill] sm:$0xff] %v1578_v25  ;;  %v1673_v45 = vld [vmem:[#allocation7 + $0x90] sm:$0xff]  ;;  %v1678_v46 = vld [vmem:[#allocation7] sm:$0xff]  ;;  %v1680_v47 = vld [vmem:[#allocation7 + $0x88] sm:$0xff] }
  0x26   :  { %2558 = vst [vmem:[#allocation28_spill] sm:$0xff] %v1582_v26  ;;  %237 = vmatpush.msra.mxu3 %v1572_v23  ;;  %218 = vmatpush.msra.mxu2 %v1576_v24  ;;  %v1688_v48 = vld [vmem:[#allocation7 + $0x80] sm:$0xff]  ;;  %v1691_v49 = vld [vmem:[#allocation8 + $0x78] sm:$0xff]  ;;  %v1697_v50 = vld [vmem:[#allocation8 + $0x70] sm:$0xff] }
  0x27   :  { %141 = vmatpush.msra.mxu0 %v1558_v19  ;;  %165 = vmatpush.msra.mxu1 %v1558_v19  ;;  %2559 = vst [vmem:[#allocation29_spill] sm:$0xff] %v1586_v27  ;;  %v1699_v51 = vld [vmem:[#allocation8 + $0xf8] sm:$0xff]  ;;  %v1701_v52 = vld [vmem:[#allocation8 + $0xf0] sm:$0xff]  ;;  %v1706_v53 = vld [vmem:[#allocation8 + $0x68] sm:$0xff] }
  0x28   :  { %2560 = vst [vmem:[#allocation30_spill] sm:$0xff] %v1588_v28  ;;  %238 = vmatpush.msra.mxu3 %v1582_v26  ;;  %219 = vmatpush.msra.mxu2 %v1586_v27  ;;  %v1708_v54 = vld [vmem:[#allocation8 + $0xe8] sm:$0xff]  ;;  %v1713_v55 = vld [vmem:[#allocation8 + $0x60] sm:$0xff]  ;;  %v1718_v56 = vld [vmem:[#allocation8 + $0x58] sm:$0xff] }
  0x29   :  { %142 = vmatpush.msra.mxu0 %v1568_v22  ;;  %166 = vmatpush.msra.mxu1 %v1568_v22  ;;  %2561 = vst [vmem:[#allocation31_spill] sm:$0xff] %v1592_v29  ;;  %v1722_v57 = vld [vmem:[#allocation8 + $0x50] sm:$0xff]  ;;  %v1726_v58 = vld [vmem:[#allocation8 + $0x48] sm:$0xff]  ;;  %v116_v59 = vld [vmem:[#allocation2] sm:$0xff] }
  0x2a   :  { %2562 = vst [vmem:[#allocation32_spill] sm:$0xff] %v1596_v30  ;;  %239 = vmatpush.msra.mxu3 %v1592_v29  ;;  %220 = vmatpush.msra.mxu2 %v1596_v30  ;;  %v1771_v63 = vld [vmem:[#allocation8 + $0x40] sm:$0xff] }
  0x2b   :  { %143 = vmatpush.msra.mxu0 %v1578_v25  ;;  %2563 = vst [vmem:[#allocation33_spill] sm:$0xff] %v1598_v31  ;;  %167 = vmatpush.msra.mxu1 %v1578_v25 }
  0x2c   :  { %2564 = vst [vmem:[#allocation34_spill] sm:$0xff] %v1606_v33  ;;  %240 = vmatpush.msra.mxu3 %v1602_v32  ;;  %221 = vmatpush.msra.mxu2 %v1606_v33 }
  0x2d   :  { %144 = vmatpush.msra.mxu0 %v1588_v28  ;;  %2565 = vst [vmem:[#allocation35_spill] sm:$0xff] %v1608_v34  ;;  %168 = vmatpush.msra.mxu1 %v1588_v28 }
  0x2e   :  { %2566 = vst [vmem:[#allocation36_spill] sm:$0xff] %v1614_v35  ;;  %222 = vmatpush.msra.mxu2 %v1654_v38  ;;  %241 = vmatpush.msra.mxu3 %v1656_v39 }
  0x2f   :  { %145 = vmatpush.msra.mxu0 %v1598_v31  ;;  %169 = vmatpush.msra.mxu1 %v1598_v31  ;;  %2567 = vst [vmem:[#allocation37_spill] sm:$0xff] %v1619_v36 }
  0x30   :  { %2568 = vst [vmem:[#allocation38_spill] sm:$0xff] %v1654_v38  ;;  %223 = vmatpush.msra.mxu2 %v1660_v40  ;;  %242 = vmatpush.msra.mxu3 %v1662_v41 }
  0x31   :  { %146 = vmatpush.msra.mxu0 %v1608_v34  ;;  %170 = vmatpush.msra.mxu1 %v1608_v34  ;;  %2569 = vst [vmem:[#allocation39_spill] sm:$0xff] %v1660_v40 }
  0x32   :  { %2570 = vst [vmem:[#allocation40_spill] sm:$0xff] %v1662_v41  ;;  %224 = vmatpush.msra.mxu2 %v1667_v42  ;;  %243 = vmatpush.msra.mxu3 %v1669_v43 }
  0x33   :  { %147 = vmatpush.msra.mxu0 %v1614_v35  ;;  %171 = vmatpush.msra.mxu1 %v1614_v35  ;;  %2571 = vst [vmem:[#allocation41_spill] sm:$0xff] %v1667_v42 }
  0x34   :  { %2572 = vst [vmem:[#allocation42_spill] sm:$0xff] %v1671_v44  ;;  %225 = vmatpush.msra.mxu2 %v1671_v44  ;;  %244 = vmatpush.msra.mxu3 %v1673_v45 }
  0x35   :  { %148 = vmatpush.msra.mxu0 %v1619_v36  ;;  %172 = vmatpush.msra.mxu1 %v1619_v36  ;;  %2573 = vst [vmem:[#allocation43_spill] sm:$0xff] %v1678_v46 }
  0x36   :  { %149 = vmatmul.f32.vlgmr.msra.gmra.mxu0 %v2455_v37  ;;  %2574 = vst [vmem:[#allocation44_spill] sm:$0xff] %v1680_v47  ;;  %226 = vmatpush.msra.mxu2 %v1678_v46 }
  0x37   :  { %254 = vmatpush.msrb.mxu0 %v1499_v0  ;;  %276 = vmatpush.msrb.mxu1 %v1512_v4  ;;  %2575 = vst [vmem:[#allocation45_spill] sm:$0xff] %v1688_v48 }
  0x38   :  { %245 = vmatpush.msra.mxu3 %v1680_v47  ;;  %296 = vmatpush.msrb.mxu2 %v1520_v7  ;;  %2576 = vst [vmem:[#allocation46_spill] sm:$0xff] %v1699_v51 }
  0x39   :  { %255 = vmatpush.msrb.mxu0 %v1501_v1  ;;  %277 = vmatpush.msrb.mxu1 %v1514_v5 }
  0x3a   :  { %246 = vmatpush.msra.mxu3 %v1688_v48  ;;  %297 = vmatpush.msrb.mxu2 %v1522_v8 }
  0x3b   :  { %256 = vmatpush.msrb.mxu0 %v1505_v2  ;;  %278 = vmatpush.msrb.mxu1 %v1526_v9 }
  0x3c   :  { %247 = vmatmul.f32.vlgmr.msra.gmra.mxu3 %v2455_v37  ;;  %298 = vmatpush.msrb.mxu2 %v1532_v11  ;;  %v1785_v37 = vld [vmem:[#allocation8 + $0xd0] sm:$0xff] }
  0x3d   :  { %257 = vmatpush.msrb.mxu0 %v1509_v3  ;;  %279 = vmatpush.msrb.mxu1 %v1536_v12 }
  0x3e   :  { %349 = vmatpush.msrb.mxu3 %v1691_v49  ;;  %299 = vmatpush.msrb.mxu2 %v1542_v14 }
  0x3f   :  { %258 = vmatpush.msrb.mxu0 %v1517_v6  ;;  %280 = vmatpush.msrb.mxu1 %v1546_v15 }
  0x40   :  { %350 = vmatpush.msrb.mxu3 %v1697_v50  ;;  %300 = vmatpush.msrb.mxu2 %v1552_v17 }
  0x41   :  { %259 = vmatpush.msrb.mxu0 %v1528_v10  ;;  %281 = vmatpush.msrb.mxu1 %v1556_v18 }
  0x42   :  { %351 = vmatpush.msrb.mxu3 %v1706_v53  ;;  %301 = vmatpush.msrb.mxu2 %v1562_v20 }
  0x43   :  { %260 = vmatpush.msrb.mxu0 %v1538_v13  ;;  %282 = vmatpush.msrb.mxu1 %v1566_v21 }
  0x44   :  { %352 = vmatpush.msrb.mxu3 %v1713_v55  ;;  %302 = vmatpush.msrb.mxu2 %v1572_v23 }
  0x45   :  { %261 = vmatpush.msrb.mxu0 %v1548_v16  ;;  %283 = vmatpush.msrb.mxu1 %v1576_v24 }
  0x46   :  { %353 = vmatpush.msrb.mxu3 %v1718_v56  ;;  %303 = vmatpush.msrb.mxu2 %v1582_v26 }
  0x47   :  { %262 = vmatpush.msrb.mxu0 %v1558_v19  ;;  %284 = vmatpush.msrb.mxu1 %v1586_v27 }
  0x48   :  { %354 = vmatpush.msrb.mxu3 %v1722_v57  ;;  %304 = vmatpush.msrb.mxu2 %v1592_v29 }
  0x49   :  { %263 = vmatpush.msrb.mxu0 %v1568_v22  ;;  %285 = vmatpush.msrb.mxu1 %v1596_v30 }
  0x4a   :  { %355 = vmatpush.msrb.mxu3 %v1726_v58  ;;  %305 = vmatpush.msrb.mxu2 %v1602_v32 }
  0x4b   :  { %264 = vmatpush.msrb.mxu0 %v1578_v25  ;;  %286 = vmatpush.msrb.mxu1 %v1606_v33 }
  0x4c   :  { %306 = vmatpush.msrb.mxu2 %v1656_v39  ;;  %356 = vmatpush.msrb.mxu3 %v1771_v63 }
  0x4d   :  { %265 = vmatpush.msrb.mxu0 %v1588_v28  ;;  %287 = vmatpush.msrb.mxu1 %v1654_v38 }
  0x4e   :  { %307 = vmatpush.msrb.mxu2 %v1662_v41 }
  0x4f   :  { %266 = vmatpush.msrb.mxu0 %v1598_v31  ;;  %288 = vmatpush.msrb.mxu1 %v1660_v40 }
  0x50   :  { %308 = vmatpush.msrb.mxu2 %v1669_v43 }
  0x51   :  { %267 = vmatpush.msrb.mxu0 %v1608_v34  ;;  %289 = vmatpush.msrb.mxu1 %v1667_v42 }
  0x52   :  { %309 = vmatpush.msrb.mxu2 %v1673_v45 }
  0x53   :  { %268 = vmatpush.msrb.mxu0 %v1614_v35  ;;  %290 = vmatpush.msrb.mxu1 %v1671_v44 }
  0x54   :  { %310 = vmatpush.msrb.mxu2 %v1680_v47 }
  0x55   :  { %269 = vmatpush.msrb.mxu0 %v1619_v36  ;;  %291 = vmatpush.msrb.mxu1 %v1678_v46 }
  0x56   :  { %311 = vmatpush.msrb.mxu2 %v1688_v48 }
  0x57   :  { %369 = vmatpush.msra.mxu0 %v1699_v51 }
  0x59   :  { %370 = vmatpush.msra.mxu0 %v1701_v52 }
  0x5b   :  { %371 = vmatpush.msra.mxu0 %v1708_v54 }
  0xb3   :  { %v150_v60 = vpop.f32.mrf.mxu0 }
  0xb4   :  { %v153_v61 = vadd.f32 %v150_v60, %v116_v59  ;;  %v1773_v59 = vld [vmem:[#allocation8 + $0xe0] sm:$0xff]  ;;  %v1777_v60 = vld [vmem:[#allocation8 + $0x38] sm:$0xff] }
  0xb5   :  { %372 = vmatpush.msra.mxu0 %v1773_v59  ;;  %357 = vmatpush.msrb.mxu3 %v1777_v60 }
  0xb6   :  { %1132 = vtanh.f32 %v153_v61  ;;  %v1779_v61 = vld [vmem:[#allocation8 + $0xd8] sm:$0xff] }
  0xb7   :  { %373 = vmatpush.msra.mxu0 %v1779_v61 }
  0xb9   :  { %374 = vmatpush.msra.mxu0 %v1785_v37 }
  0xbc   :  { %v1133_v62 = vpop.eup %1132 }
  0xbd   :  { %173 = vmatmul.f32.vlgmr.msra.gmra.mxu1 %v1133_v62  ;;  %227 = vmatmul.f32.vlgmr.msra.gmra.mxu2 %v1133_v62  ;;  %v1783_v62 = vld [vmem:[#allocation8 + $0x30] sm:$0xff] }
  0xbe   :  { %394 = vmatpush.msra.mxu1 %v1499_v0  ;;  %416 = vmatpush.msra.mxu2 %v1512_v4 }
  0xbf   :  { %358 = vmatpush.msrb.mxu3 %v1783_v62 }
  0xc0   :  { %395 = vmatpush.msra.mxu1 %v1501_v1  ;;  %417 = vmatpush.msra.mxu2 %v1514_v5 }
  0xc2   :  { %396 = vmatpush.msra.mxu1 %v1505_v2  ;;  %418 = vmatpush.msra.mxu2 %v1526_v9 }
  0xc4   :  { %397 = vmatpush.msra.mxu1 %v1509_v3  ;;  %419 = vmatpush.msra.mxu2 %v1536_v12 }
  0xc6   :  { %398 = vmatpush.msra.mxu1 %v1517_v6  ;;  %420 = vmatpush.msra.mxu2 %v1546_v15 }
  0xc8   :  { %399 = vmatpush.msra.mxu1 %v1528_v10  ;;  %421 = vmatpush.msra.mxu2 %v1556_v18 }
  0xca   :  { %400 = vmatpush.msra.mxu1 %v1538_v13  ;;  %422 = vmatpush.msra.mxu2 %v1566_v21 }
  0xcc   :  { %401 = vmatpush.msra.mxu1 %v1548_v16  ;;  %423 = vmatpush.msra.mxu2 %v1576_v24 }
  0xce   :  { %402 = vmatpush.msra.mxu1 %v1558_v19  ;;  %424 = vmatpush.msra.mxu2 %v1586_v27  ;;  %v1831_v27 = vld [vmem:[#allocation8 + $0x88] sm:$0xff] }
  0xcf   :  { %2584 = vst [vmem:[#allocation54_spill] sm:$0xff] %v1831_v27 }
  0xd0   :  { %403 = vmatpush.msra.mxu1 %v1568_v22  ;;  %425 = vmatpush.msra.mxu2 %v1596_v30  ;;  %v1825_v30 = vld [vmem:[#allocation8 + $0x98] sm:$0xff]  ;;  %v1827_v22 = vld [vmem:[#allocation8 + $0x90] sm:$0xff] }
  0xd1   :  { %2582 = vst [vmem:[#allocation52_spill] sm:$0xff] %v1825_v30 }
  0xd2   :  { %404 = vmatpush.msra.mxu1 %v1578_v25  ;;  %426 = vmatpush.msra.mxu2 %v1606_v33  ;;  %v1817_v33 = vld [vmem:[#allocation8] sm:$0xff]  ;;  %2583 = vst [vmem:[#allocation53_spill] sm:$0xff] %v1827_v22 }
  0xd3   :  { %2580 = vst [vmem:[#allocation50_spill] sm:$0xff] %v1817_v33  ;;  %v1819_v25 = vld [vmem:[#allocation8 + $0xa0] sm:$0xff] }
  0xd4   :  { %405 = vmatpush.msra.mxu1 %v1588_v28  ;;  %427 = vmatpush.msra.mxu2 %v1654_v38  ;;  %v1811_v38 = vld [vmem:[#allocation8 + $0x8] sm:$0xff]  ;;  %2581 = vst [vmem:[#allocation51_spill] sm:$0xff] %v1819_v25 }
  0xd5   :  { %2579 = vst [vmem:[#allocation49_spill] sm:$0xff] %v1811_v38  ;;  %v1813_v28 = vld [vmem:[#allocation8 + $0xa8] sm:$0xff] }
  0xd6   :  { %406 = vmatpush.msra.mxu1 %v1598_v31  ;;  %428 = vmatpush.msra.mxu2 %v1660_v40  ;;  %v1807_v40 = vld [vmem:[#allocation8 + $0x10] sm:$0xff] }
  0xd7   :  { %2578 = vst [vmem:[#allocation48_spill] sm:$0xff] %v1807_v40  ;;  %v1809_v31 = vld [vmem:[#allocation8 + $0xb0] sm:$0xff] }
  0xd8   :  { %407 = vmatpush.msra.mxu1 %v1608_v34  ;;  %429 = vmatpush.msra.mxu2 %v1667_v42  ;;  %v1801_v42 = vld [vmem:[#allocation8 + $0x18] sm:$0xff] }
  0xd9   :  { %2577 = vst [vmem:[#allocation47_spill] sm:$0xff] %v1801_v42  ;;  %v1803_v34 = vld [vmem:[#allocation8 + $0xb8] sm:$0xff] }
  0xda   :  { %408 = vmatpush.msra.mxu1 %v1614_v35  ;;  %430 = vmatpush.msra.mxu2 %v1671_v44  ;;  %v1795_v44 = vld [vmem:[#allocation8 + $0x20] sm:$0xff] }
  0xdb   :  { %v1797_v35 = vld [vmem:[#allocation8 + $0xc0] sm:$0xff] }
  0xdc   :  { %409 = vmatpush.msra.mxu1 %v1619_v36  ;;  %431 = vmatpush.msra.mxu2 %v1678_v46  ;;  %v1789_v46 = vld [vmem:[#allocation8 + $0x28] sm:$0xff] }
  0xdd   :  { %v1791_v36 = vld [vmem:[#allocation8 + $0xc8] sm:$0xff]  ;;  %359 = vmatpush.msrb.mxu3 %v1789_v46 }
  0xde   :  { %375 = vmatpush.msra.mxu0 %v1791_v36 }
  0xdf   :  { %360 = vmatpush.msrb.mxu3 %v1795_v44 }
  0xe0   :  { %376 = vmatpush.msra.mxu0 %v1797_v35 }
  0xe1   :  { %361 = vmatpush.msrb.mxu3 %v1801_v42 }
  0xe2   :  { %377 = vmatpush.msra.mxu0 %v1803_v34 }
  0xe3   :  { %362 = vmatpush.msrb.mxu3 %v1807_v40 }
  0xe4   :  { %378 = vmatpush.msra.mxu0 %v1809_v31 }
  0xe5   :  { %363 = vmatpush.msrb.mxu3 %v1811_v38  ;;  %v1835_v38 = vld [vmem:[#allocation8 + $0x80] sm:$0xff] }
  0xe6   :  { %379 = vmatpush.msra.mxu0 %v1813_v28  ;;  %2585 = vst [vmem:[#allocation55_spill] sm:$0xff] %v1835_v38 }
  0xe7   :  { %364 = vmatpush.msrb.mxu3 %v1817_v33 }
  0xe8   :  { %380 = vmatpush.msra.mxu0 %v1819_v25 }
  0xe9   :  { %436 = vmatpush.msra.mxu3 %v1520_v7  ;;  %v156_v7 = vld [vmem:[#allocation2 + $0x8] sm:$0xff] }
  0xea   :  { %381 = vmatpush.msra.mxu0 %v1825_v30 }
  0xeb   :  { %437 = vmatpush.msra.mxu3 %v1522_v8 }
  0xec   :  { %382 = vmatpush.msra.mxu0 %v1827_v22 }
  0xed   :  { %438 = vmatpush.msra.mxu3 %v1532_v11  ;;  %v248_v11 = vpop.f32.mrf.mxu3 }
  0xee   :  { %383 = vmatpush.msra.mxu0 %v1831_v27 }
  0xef   :  { %439 = vmatpush.msra.mxu3 %v1542_v14  ;;  %v1849_v14 = vld [vmem:[%s2449_s3] ss:$0 sm:$0xff] }
  0xf0   :  { %384 = vmatpush.msra.mxu0 %v1835_v38 }
  0xf1   :  { %440 = vmatpush.msra.mxu3 %v1552_v17 }
  0xf3   :  { %441 = vmatpush.msra.mxu3 %v1562_v20 }
  0xf5   :  { %442 = vmatpush.msra.mxu3 %v1572_v23 }
  0xf7   :  { %443 = vmatpush.msra.mxu3 %v1582_v26 }
  0xf9   :  { %444 = vmatpush.msra.mxu3 %v1592_v29 }
  0xfb   :  { %445 = vmatpush.msra.mxu3 %v1602_v32 }
  0xfd   :  { %446 = vmatpush.msra.mxu3 %v1656_v39 }
  0xff   :  { %447 = vmatpush.msra.mxu3 %v1662_v41 }
 0x101   :  { %448 = vmatpush.msra.mxu3 %v1669_v43 }
 0x103   :  { %449 = vmatpush.msra.mxu3 %v1673_v45 }
 0x105   :  { %450 = vmatpush.msra.mxu3 %v1680_v47 }
 0x107   :  { %451 = vmatpush.msra.mxu3 %v1688_v48 }
 0x13a   :  { %v174_v8 = vpop.f32.mrf.mxu1 }
 0x13b   :  { %v177_v33 = vadd.f32 %v174_v8, %v156_v7 }
 0x13d   :  { %1134 = vtanh.f32 %v177_v33  ;;  %v2590_v33 = vld [vmem:[#allocation32_spill] sm:$0xff] }
 0x140   :  { %v228_v17 = vpop.f32.mrf.mxu2 }
 0x141   :  { %v229_v23 = vadd.f32 %v1849_v14, %v228_v17  ;;  %v2587_v17 = vld [vmem:[#allocation29_spill] sm:$0xff] }
 0x143   :  { %v1135_v26 = vpop.eup %1134  ;;  %v249_v7 = vadd.f32 %v248_v11, %v229_v23  ;;  %v2586_v11 = vmov 0.0   ;;  %v2588_v23 = vld [vmem:[#allocation24_spill] sm:$0xff] }
 0x144   :  { %270 = vmatmul.f32.vlgmr.msrb.gmra.mxu0 %v1135_v26  ;;  %292 = vmatmul.f32.vlgmr.msrb.gmra.mxu1 %v1135_v26  ;;  %v2589_v26 = vld [vmem:[#allocation49_spill] sm:$0xff] }
 0x145   :  { %1136 = vtanh.f32 %v249_v7  ;;  %457 = vmatpush.msrb.mxu0 %v1691_v49  ;;  %477 = vmatpush.msrb.mxu1 %v1699_v51  ;;  %v2591_v7 = vld [vmem:[#allocation27_spill] sm:$0xff] }
 0x147   :  { %458 = vmatpush.msrb.mxu0 %v1697_v50  ;;  %478 = vmatpush.msrb.mxu1 %v1701_v52 }
 0x149   :  { %459 = vmatpush.msrb.mxu0 %v1706_v53  ;;  %479 = vmatpush.msrb.mxu1 %v1708_v54 }
 0x14b   :  { %v1137_v8 = vpop.eup %1136  ;;  %460 = vmatpush.msrb.mxu0 %v1713_v55  ;;  %480 = vmatpush.msrb.mxu1 %v1773_v59 }
 0x14c   :  { %312 = vmatmul.f32.vlgmr.msrb.gmra.mxu2 %v1137_v8  ;;  %365 = vmatmul.f32.vlgmr.msrb.gmra.mxu3 %v1137_v8  ;;  %v2592_v8 = vld [vmem:[#allocation50_spill] sm:$0xff] }
 0x14d   :  { %385 = vmatmul.f32.vlgmr.msra.gmra.mxu0 %v2586_v11  ;;  %481 = vmatpush.msrb.mxu1 %v1779_v61  ;;  %v2593_v11 = vld [vmem:[#allocation34_spill] sm:$0xff] }
 0x14e   :  { %461 = vmatpush.msrb.mxu0 %v1718_v56  ;;  %502 = vmatpush.msrb.mxu2 %v1499_v0 }
 0x14f   :  { %482 = vmatpush.msrb.mxu1 %v1785_v37  ;;  %524 = vmatpush.msrb.mxu3 %v1512_v4 }
 0x150   :  { %462 = vmatpush.msrb.mxu0 %v1722_v57  ;;  %503 = vmatpush.msrb.mxu2 %v1501_v1 }
 0x151   :  { %483 = vmatpush.msrb.mxu1 %v1791_v36  ;;  %525 = vmatpush.msrb.mxu3 %v1514_v5 }
 0x152   :  { %463 = vmatpush.msrb.mxu0 %v1726_v58  ;;  %504 = vmatpush.msrb.mxu2 %v1505_v2 }
 0x153   :  { %484 = vmatpush.msrb.mxu1 %v1797_v35  ;;  %526 = vmatpush.msrb.mxu3 %v1526_v9 }
 0x154   :  { %464 = vmatpush.msrb.mxu0 %v1771_v63  ;;  %505 = vmatpush.msrb.mxu2 %v1509_v3 }
 0x155   :  { %485 = vmatpush.msrb.mxu1 %v1803_v34  ;;  %527 = vmatpush.msrb.mxu3 %v1536_v12 }
 0x156   :  { %465 = vmatpush.msrb.mxu0 %v1777_v60  ;;  %506 = vmatpush.msrb.mxu2 %v1517_v6 }
 0x157   :  { %486 = vmatpush.msrb.mxu1 %v1809_v31  ;;  %528 = vmatpush.msrb.mxu3 %v1546_v15 }
 0x158   :  { %466 = vmatpush.msrb.mxu0 %v1783_v62  ;;  %507 = vmatpush.msrb.mxu2 %v1528_v10 }
 0x159   :  { %487 = vmatpush.msrb.mxu1 %v1813_v28  ;;  %529 = vmatpush.msrb.mxu3 %v1556_v18 }
 0x15a   :  { %467 = vmatpush.msrb.mxu0 %v1789_v46  ;;  %508 = vmatpush.msrb.mxu2 %v1538_v13 }
 0x15b   :  { %488 = vmatpush.msrb.mxu1 %v1819_v25  ;;  %530 = vmatpush.msrb.mxu3 %v1566_v21  ;;  %v2597_v21 = vld [vmem:[#allocation33_spill] sm:$0xff] }
 0x15c   :  { %468 = vmatpush.msrb.mxu0 %v1795_v44  ;;  %509 = vmatpush.msrb.mxu2 %v1548_v16  ;;  %v2599_v16 = vld [vmem:[#allocation39_spill] sm:$0xff] }
 0x15d   :  { %489 = vmatpush.msrb.mxu1 %v1825_v30  ;;  %531 = vmatpush.msrb.mxu3 %v1576_v24  ;;  %v2594_v24 = vld [vmem:[#allocation30_spill] sm:$0xff] }
 0x15e   :  { %469 = vmatpush.msrb.mxu0 %v1801_v42  ;;  %510 = vmatpush.msrb.mxu2 %v1558_v19  ;;  %v2595_v19 = vld [vmem:[#allocation16_spill] sm:$0xff] }
 0x15f   :  { %490 = vmatpush.msrb.mxu1 %v1827_v22  ;;  %532 = vmatpush.msrb.mxu3 %v2587_v17  ;;  %v2596_v17 = vld [vmem:[#allocation38_spill] sm:$0xff] }
 0x160   :  { %470 = vmatpush.msrb.mxu0 %v1807_v40  ;;  %511 = vmatpush.msrb.mxu2 %v2588_v23  ;;  %v2598_v23 = vld [vmem:[#allocation17_spill] sm:$0xff] }
 0x161   :  { %491 = vmatpush.msrb.mxu1 %v1831_v27  ;;  %533 = vmatpush.msrb.mxu3 %v2590_v33  ;;  %v2600_v33 = vld [vmem:[#allocation35_spill] sm:$0xff] }
 0x162   :  { %471 = vmatpush.msrb.mxu0 %v2589_v26  ;;  %512 = vmatpush.msrb.mxu2 %v2591_v7  ;;  %v2602_v7 = vld [vmem:[#allocation41_spill] sm:$0xff] }
 0x163   :  { %492 = vmatpush.msrb.mxu1 %v1835_v38  ;;  %534 = vmatpush.msrb.mxu3 %v2593_v11  ;;  %v2601_v38 = vld [vmem:[#allocation18_spill] sm:$0xff]  ;;  %v2604_v11 = vld [vmem:[#allocation19_spill] sm:$0xff] }
 0x164   :  { %472 = vmatpush.msrb.mxu0 %v2592_v8  ;;  %513 = vmatpush.msrb.mxu2 %v2594_v24  ;;  %v2603_v8 = vld [vmem:[#allocation36_spill] sm:$0xff]  ;;  %v2605_v24 = vld [vmem:[#allocation42_spill] sm:$0xff] }
 0x165   :  { %535 = vmatpush.msrb.mxu3 %v2596_v17  ;;  %v2607_v17 = vld [vmem:[#allocation21_spill] sm:$0xff] }
 0x166   :  { %544 = vmatpush.msra.mxu0 %v2595_v19  ;;  %514 = vmatpush.msrb.mxu2 %v2597_v21  ;;  %v2606_v19 = vld [vmem:[#allocation37_spill] sm:$0xff]  ;;  %v2608_v21 = vld [vmem:[#allocation43_spill] sm:$0xff] }
 0x167   :  { %536 = vmatpush.msrb.mxu3 %v2599_v16  ;;  %v2609_v16 = vld [vmem:[#allocation25_spill] sm:$0xff] }
 0x168   :  { %545 = vmatpush.msra.mxu0 %v2598_v23  ;;  %515 = vmatpush.msrb.mxu2 %v2600_v33  ;;  %v2610_v33 = vld [vmem:[#allocation28_spill] sm:$0xff] }
 0x169   :  { %537 = vmatpush.msrb.mxu3 %v2602_v7 }
 0x16a   :  { %546 = vmatpush.msra.mxu0 %v2601_v38  ;;  %516 = vmatpush.msrb.mxu2 %v2603_v8 }
 0x16b   :  { %538 = vmatpush.msrb.mxu3 %v2605_v24 }
 0x16c   :  { %547 = vmatpush.msra.mxu0 %v2604_v11  ;;  %517 = vmatpush.msrb.mxu2 %v2606_v19 }
 0x16d   :  { %539 = vmatpush.msrb.mxu3 %v2608_v21  ;;  %v253_v21 = vld [vmem:[#allocation2 + $0x10] sm:$0xff] }
 0x16e   :  { %548 = vmatpush.msra.mxu0 %v2607_v17 }
 0x170   :  { %549 = vmatpush.msra.mxu0 %v1562_v20 }
 0x172   :  { %550 = vmatpush.msra.mxu0 %v2609_v16 }
 0x174   :  { %551 = vmatpush.msra.mxu0 %v2610_v33 }
 0x176   :  { %552 = vmatpush.msra.mxu0 %v1592_v29 }
 0x178   :  { %553 = vmatpush.msra.mxu0 %v1602_v32 }
 0x17a   :  { %554 = vmatpush.msra.mxu0 %v1656_v39 }
 0x17c   :  { %555 = vmatpush.msra.mxu0 %v1662_v41  ;;  %v1943_v41 = vld [vmem:[%s2451_s5] ss:$0 sm:$0xff] }
 0x17e   :  { %556 = vmatpush.msra.mxu0 %v1669_v43 }
 0x180   :  { %557 = vmatpush.msra.mxu0 %v1673_v45 }
 0x182   :  { %558 = vmatpush.msra.mxu0 %v1680_v47 }
 0x184   :  { %559 = vmatpush.msra.mxu0 %v1688_v48 }
 0x1c1   :  { %v271_v24 = vpop.f32.mrf.mxu0  ;;  %v293_v29 = vpop.f32.mrf.mxu1 }
 0x1c2   :  { %v274_v19 = vadd.f32 %v271_v24, %v253_v21  ;;  %v294_v47 = vadd.f32 %v1849_v14, %v293_v29 }
 0x1c4   :  { %1138 = vtanh.f32 %v274_v19 }
 0x1ca   :  { %v1139_v33 = vpop.eup %1138  ;;  %v386_v48 = vpop.f32.mrf.mxu0 }
 0x1cb   :  { %410 = vmatmul.f32.vlgmr.msra.gmra.mxu1 %v1139_v33  ;;  %432 = vmatmul.f32.vlgmr.msra.gmra.mxu2 %v1139_v33 }
 0x1cc   :  { %585 = vmatpush.msra.mxu2 %v1699_v51  ;;  %565 = vmatpush.msra.mxu1 %v1691_v49 }
 0x1ce   :  { %586 = vmatpush.msra.mxu2 %v1701_v52  ;;  %566 = vmatpush.msra.mxu1 %v1697_v50 }
 0x1cf   :  { %v313_v19 = vpop.f32.mrf.mxu2  ;;  %v366_v21 = vpop.f32.mrf.mxu3 }
 0x1d0   :  { %v314_v24 = vadd.f32 %v313_v19, %v294_v47  ;;  %v367_v33 = vadd.f32 %v1943_v41, %v366_v21  ;;  %587 = vmatpush.msra.mxu2 %v1708_v54  ;;  %567 = vmatpush.msra.mxu1 %v1706_v53  ;;  %v2626_v19 = vld [vmem:[#allocation35_spill] sm:$0xff]  ;;  %v2630_v21 = vld [vmem:[#allocation28_spill] sm:$0xff] }
 0x1d2   :  { %1140 = vtanh.f32 %v314_v24  ;;  %v387_v51 = vadd.f32 %v386_v48, %v367_v33  ;;  %588 = vmatpush.msra.mxu2 %v1773_v59  ;;  %568 = vmatpush.msra.mxu1 %v1713_v55  ;;  %v2624_v48 = vld [vmem:[#allocation33_spill] sm:$0xff]  ;;  %v2631_v24 = vld [vmem:[#allocation43_spill] sm:$0xff] }
 0x1d3   :  { %v2635_v33 = vld [vmem:[#allocation45_spill] sm:$0xff] }
 0x1d4   :  { %1142 = vtanh.f32 %v387_v51  ;;  %589 = vmatpush.msra.mxu2 %v1779_v61  ;;  %569 = vmatpush.msra.mxu1 %v1718_v56  ;;  %v2625_v51 = vld [vmem:[#allocation38_spill] sm:$0xff] }
 0x1d6   :  { %590 = vmatpush.msra.mxu2 %v1785_v37  ;;  %570 = vmatpush.msra.mxu1 %v1722_v57 }
 0x1d8   :  { %v1141_v29 = vpop.eup %1140  ;;  %591 = vmatpush.msra.mxu2 %v1791_v36  ;;  %571 = vmatpush.msra.mxu1 %v1726_v58 }
 0x1d9   :  { %452 = vmatmul.f32.vlgmr.msra.gmra.mxu3 %v1141_v29  ;;  %473 = vmatmul.f32.vlgmr.msrb.gmra.mxu0 %v1141_v29  ;;  %v393_v29 = vld [vmem:[#allocation2 + $0x18] sm:$0xff] }
 0x1da   :  { %v1961_v47 = vpop.eup %1142  ;;  %592 = vmatpush.msra.mxu2 %v1797_v35  ;;  %572 = vmatpush.msra.mxu1 %v1771_v63 }
 0x1db   :  { %493 = vmatmul.f32.vlgmr.msrb.gmra.mxu1 %v1961_v47  ;;  %610 = vmatpush.msra.mxu3 %v1499_v0  ;;  %v2611_v0 = vld [vmem:[#allocation20_spill] sm:$0xff] }
 0x1dc   :  { %593 = vmatpush.msra.mxu2 %v1803_v34  ;;  %573 = vmatpush.msra.mxu1 %v1777_v60 }
 0x1dd   :  { %611 = vmatpush.msra.mxu3 %v1501_v1  ;;  %632 = vmatpush.msrb.mxu0 %v1512_v4  ;;  %v2612_v1 = vld [vmem:[#allocation23_spill] sm:$0xff]  ;;  %v2615_v4 = vld [vmem:[#allocation22_spill] sm:$0xff] }
 0x1de   :  { %594 = vmatpush.msra.mxu2 %v1809_v31  ;;  %574 = vmatpush.msra.mxu1 %v1783_v62 }
 0x1df   :  { %612 = vmatpush.msra.mxu3 %v1505_v2  ;;  %633 = vmatpush.msrb.mxu0 %v1514_v5  ;;  %v2613_v2 = vld [vmem:[#allocation55_spill] sm:$0xff]  ;;  %v2616_v5 = vld [vmem:[#allocation26_spill] sm:$0xff] }
 0x1e0   :  { %595 = vmatpush.msra.mxu2 %v1813_v28  ;;  %575 = vmatpush.msra.mxu1 %v1789_v46 }
 0x1e1   :  { %613 = vmatpush.msra.mxu3 %v1509_v3  ;;  %634 = vmatpush.msrb.mxu0 %v1526_v9  ;;  %v2614_v3 = vld [vmem:[#allocation50_spill] sm:$0xff]  ;;  %v2618_v9 = vld [vmem:[#allocation24_spill] sm:$0xff] }
 0x1e2   :  { %596 = vmatpush.msra.mxu2 %v1819_v25  ;;  %576 = vmatpush.msra.mxu1 %v1795_v44 }
 0x1e3   :  { %614 = vmatpush.msra.mxu3 %v1517_v6  ;;  %635 = vmatpush.msrb.mxu0 %v1536_v12  ;;  %v2617_v6 = vld [vmem:[#allocation16_spill] sm:$0xff]  ;;  %v2620_v12 = vld [vmem:[#allocation27_spill] sm:$0xff] }
 0x1e4   :  { %597 = vmatpush.msra.mxu2 %v1825_v30  ;;  %577 = vmatpush.msra.mxu1 %v1801_v42 }
 0x1e5   :  { %615 = vmatpush.msra.mxu3 %v1528_v10  ;;  %636 = vmatpush.msrb.mxu0 %v1546_v15  ;;  %v2619_v10 = vld [vmem:[#allocation29_spill] sm:$0xff]  ;;  %v2622_v15 = vld [vmem:[#allocation30_spill] sm:$0xff] }
 0x1e6   :  { %598 = vmatpush.msra.mxu2 %v1827_v22  ;;  %578 = vmatpush.msra.mxu1 %v1807_v40 }
 0x1e7   :  { %616 = vmatpush.msra.mxu3 %v1538_v13  ;;  %637 = vmatpush.msrb.mxu0 %v1556_v18  ;;  %v2621_v13 = vld [vmem:[#allocation32_spill] sm:$0xff]  ;;  %v2623_v18 = vld [vmem:[#allocation34_spill] sm:$0xff] }
 0x1e8   :  { %599 = vmatpush.msra.mxu2 %v1831_v27  ;;  %579 = vmatpush.msra.mxu1 %v2589_v26 }
 0x1e9   :  { %617 = vmatpush.msra.mxu3 %v2611_v0  ;;  %638 = vmatpush.msrb.mxu0 %v2612_v1 }
 0x1ea   :  { %600 = vmatpush.msra.mxu2 %v2613_v2  ;;  %580 = vmatpush.msra.mxu1 %v2614_v3 }
 0x1eb   :  { %618 = vmatpush.msra.mxu3 %v2615_v4  ;;  %639 = vmatpush.msrb.mxu0 %v2616_v5 }
 0x1ec   :  { %652 = vmatpush.msrb.mxu1 %v2617_v6 }
 0x1ed   :  { %619 = vmatpush.msra.mxu3 %v2618_v9  ;;  %640 = vmatpush.msrb.mxu0 %v2619_v10  ;;  %v2636_v9 = vld [vmem:[#allocation46_spill] sm:$0xff] }
 0x1ee   :  { %653 = vmatpush.msrb.mxu1 %v2598_v23  ;;  %v2627_v23 = vld [vmem:[#allocation39_spill] sm:$0xff] }
 0x1ef   :  { %620 = vmatpush.msra.mxu3 %v2620_v12  ;;  %641 = vmatpush.msrb.mxu0 %v2621_v13 }
 0x1f0   :  { %654 = vmatpush.msrb.mxu1 %v2601_v38  ;;  %v2628_v38 = vld [vmem:[#allocation37_spill] sm:$0xff] }
 0x1f1   :  { %621 = vmatpush.msra.mxu3 %v2622_v15  ;;  %642 = vmatpush.msrb.mxu0 %v2623_v18 }
 0x1f2   :  { %655 = vmatpush.msrb.mxu1 %v2604_v11  ;;  %v2629_v11 = vld [vmem:[#allocation42_spill] sm:$0xff] }
 0x1f3   :  { %622 = vmatpush.msra.mxu3 %v2624_v48  ;;  %643 = vmatpush.msrb.mxu0 %v2625_v51 }
 0x1f4   :  { %656 = vmatpush.msrb.mxu1 %v2607_v17  ;;  %v2632_v17 = vld [vmem:[#allocation31_spill] sm:$0xff] }
 0x1f5   :  { %623 = vmatpush.msra.mxu3 %v2626_v19  ;;  %644 = vmatpush.msrb.mxu0 %v2627_v23 }
 0x1f6   :  { %657 = vmatpush.msrb.mxu1 %v1562_v20  ;;  %v2633_v20 = vld [vmem:[#allocation40_spill] sm:$0xff] }
 0x1f7   :  { %624 = vmatpush.msra.mxu3 %v2603_v8  ;;  %645 = vmatpush.msrb.mxu0 %v2602_v7 }
 0x1f8   :  { %658 = vmatpush.msrb.mxu1 %v2609_v16  ;;  %v2634_v16 = vld [vmem:[#allocation44_spill] sm:$0xff] }
 0x1f9   :  { %625 = vmatpush.msra.mxu3 %v2628_v38  ;;  %646 = vmatpush.msrb.mxu0 %v2629_v11 }
 0x1fa   :  { %659 = vmatpush.msrb.mxu1 %v2630_v21 }
 0x1fb   :  { %647 = vmatpush.msrb.mxu0 %v2631_v24 }
 0x1fc   :  { %660 = vmatpush.msrb.mxu1 %v2632_v17 }
 0x1fe   :  { %661 = vmatpush.msrb.mxu1 %v1602_v32 }
 0x200   :  { %662 = vmatpush.msrb.mxu1 %v1656_v39 }
 0x202   :  { %663 = vmatpush.msrb.mxu1 %v2633_v20 }
 0x204   :  { %664 = vmatpush.msrb.mxu1 %v1669_v43 }
 0x206   :  { %665 = vmatpush.msrb.mxu1 %v1673_v45 }
 0x208   :  { %666 = vmatpush.msrb.mxu1 %v2634_v16 }
 0x20a   :  { %667 = vmatpush.msrb.mxu1 %v2635_v33 }
 0x248   :  { %v411_v0 = vpop.f32.mrf.mxu1 }
 0x249   :  { %v414_v4 = vadd.f32 %v411_v0, %v393_v29 }
 0x24b   :  { %1144 = vtanh.f32 %v414_v4 }
 0x24e   :  { %v433_v17 = vpop.f32.mrf.mxu2 }
 0x24f   :  { %v434_v4 = vadd.f32 %v1849_v14, %v433_v17 }
 0x251   :  { %v1145_v6 = vpop.eup %1144 }
 0x252   :  { %518 = vmatmul.f32.vlgmr.msrb.gmra.mxu2 %v1145_v6  ;;  %540 = vmatmul.f32.vlgmr.msrb.gmra.mxu3 %v1145_v6 }
 0x253   :  { %673 = vmatpush.msrb.mxu2 %v1691_v49  ;;  %693 = vmatpush.msrb.mxu3 %v2636_v9 }
 0x255   :  { %674 = vmatpush.msrb.mxu2 %v1697_v50  ;;  %694 = vmatpush.msrb.mxu3 %v1701_v52 }
 0x256   :  { %v474_v12 = vpop.f32.mrf.mxu0 }
 0x257   :  { %v475_v21 = vadd.f32 %v1943_v41, %v474_v12  ;;  %675 = vmatpush.msrb.mxu2 %v1706_v53  ;;  %695 = vmatpush.msrb.mxu3 %v1708_v54 }
 0x258   :  { %v494_v29 = vpop.f32.mrf.mxu1 }
 0x259   :  { %v495_v0 = vadd.f32 %v494_v29, %v475_v21  ;;  %676 = vmatpush.msrb.mxu2 %v1713_v55  ;;  %696 = vmatpush.msrb.mxu3 %v1773_v59 }
 0x25b   :  { %1146 = vtanh.f32 %v495_v0  ;;  %677 = vmatpush.msrb.mxu2 %v1718_v56  ;;  %697 = vmatpush.msrb.mxu3 %v1779_v61  ;;  %v2055_v0 = vld [vmem:[#allocation5 + $0x78] sm:$0xff] }
 0x25c   :  { %v453_v6 = vpop.f32.mrf.mxu3 }
 0x25d   :  { %v454_v12 = vadd.f32 %v453_v6, %v434_v4  ;;  %678 = vmatpush.msrb.mxu2 %v1722_v57  ;;  %698 = vmatpush.msrb.mxu3 %v1785_v37  ;;  %v2058_v4 = vld [vmem:[#allocation7 + $0x78] sm:$0xff] }
 0x25f   :  { %1148 = vtanh.f32 %v454_v12  ;;  %679 = vmatpush.msrb.mxu2 %v1726_v58  ;;  %699 = vmatpush.msrb.mxu3 %v1791_v36  ;;  %v2065_v12 = vld [vmem:[#allocation5 + $0x70] sm:$0xff] }
 0x260   :  { %1150 = vtanh.f32 %v1961_v47 }
 0x261   :  { %v1147_v21 = vpop.eup %1146  ;;  %680 = vmatpush.msrb.mxu2 %v1771_v63  ;;  %700 = vmatpush.msrb.mxu3 %v1797_v35 }
 0x262   :  { %1152 = vtanh.f32 %v1147_v21  ;;  %601 = vmatmul.f32.vlgmr.msra.gmra.mxu2 %v1147_v21  ;;  %v2068_v21 = vld [vmem:[#allocation7 + $0x70] sm:$0xff] }
 0x263   :  { %681 = vmatpush.msrb.mxu2 %v1777_v60  ;;  %701 = vmatpush.msrb.mxu3 %v1803_v34 }
 0x265   :  { %v1149_v17 = vpop.eup %1148  ;;  %682 = vmatpush.msrb.mxu2 %v1783_v62  ;;  %702 = vmatpush.msrb.mxu3 %v1809_v31 }
 0x266   :  { %560 = vmatmul.f32.vlgmr.msra.gmra.mxu0 %v1149_v17  ;;  %581 = vmatmul.f32.vlgmr.msra.gmra.mxu1 %v1149_v17  ;;  %v1151_v29 = vpop.eup %1150  ;;  %v2073_v17 = vld [vmem:[#allocation5 + $0x68] sm:$0xff] }
 0x267   :  { %683 = vmatpush.msrb.mxu2 %v1789_v46  ;;  %703 = vmatpush.msrb.mxu3 %v1813_v28 }
 0x268   :  { %v1153_v47 = vpop.eup %1152  ;;  %718 = vmatpush.msra.mxu0 %v2055_v0  ;;  %740 = vmatpush.msra.mxu1 %v2058_v4 }
 0x269   :  { %v2061_v6 = vadd.f32 %v1153_v47, %v1151_v29  ;;  %684 = vmatpush.msrb.mxu2 %v1795_v44  ;;  %704 = vmatpush.msrb.mxu3 %v1819_v25  ;;  %v2076_v29 = vld [vmem:[#allocation7 + $0x68] sm:$0xff]  ;;  %v2081_v47 = vld [vmem:[#allocation5 + $0x60] sm:$0xff] }
 0x26a   :  { %719 = vmatpush.msra.mxu0 %v2065_v12  ;;  %741 = vmatpush.msra.mxu1 %v2068_v21  ;;  %v2084_v25 = vld [vmem:[#allocation7 + $0x60] sm:$0xff] }
 0x26b   :  { %685 = vmatpush.msrb.mxu2 %v1801_v42  ;;  %705 = vmatpush.msrb.mxu3 %v1825_v30  ;;  %v2089_v30 = vld [vmem:[#allocation5 + $0x58] sm:$0xff] }
 0x26c   :  { %720 = vmatpush.msra.mxu0 %v2073_v17  ;;  %742 = vmatpush.msra.mxu1 %v2076_v29  ;;  %v2092_v42 = vld [vmem:[#allocation7 + $0x58] sm:$0xff] }
 0x26d   :  { %686 = vmatpush.msrb.mxu2 %v1807_v40  ;;  %706 = vmatpush.msrb.mxu3 %v1827_v22  ;;  %2637 = vst [vmem:[#allocation17_spill] sm:$0xff] %v2092_v42  ;;  %v2097_v22 = vld [vmem:[#allocation5 + $0x50] sm:$0xff]  ;;  %v2100_v40 = vld [vmem:[#allocation7 + $0xf8] sm:$0xff] }
 0x26e   :  { %721 = vmatpush.msra.mxu0 %v2081_v47  ;;  %743 = vmatpush.msra.mxu1 %v2084_v25  ;;  %2638 = vst [vmem:[#allocation18_spill] sm:$0xff] %v2100_v40 }
 0x26f   :  { %687 = vmatpush.msrb.mxu2 %v2589_v26  ;;  %707 = vmatpush.msrb.mxu3 %v1831_v27  ;;  %v2103_v27 = vld [vmem:[#allocation7 + $0x50] sm:$0xff]  ;;  %v2106_v26 = vld [vmem:[#allocation5 + $0x48] sm:$0xff] }
 0x270   :  { %722 = vmatpush.msra.mxu0 %v2089_v30  ;;  %744 = vmatpush.msra.mxu1 %v2092_v42  ;;  %2639 = vst [vmem:[#allocation41_spill] sm:$0xff] %v2103_v27  ;;  %v2109_v42 = vld [vmem:[#allocation7 + $0xf0] sm:$0xff] }
 0x271   :  { %688 = vmatpush.msrb.mxu2 %v2614_v3  ;;  %708 = vmatpush.msrb.mxu3 %v2613_v2  ;;  %2640 = vst [vmem:[#allocation36_spill] sm:$0xff] %v2109_v42  ;;  %v2113_v2 = vld [vmem:[#allocation5 + $0x40] sm:$0xff]  ;;  %v2116_v3 = vld [vmem:[#allocation7 + $0xe8] sm:$0xff] }
 0x272   :  { %723 = vmatpush.msra.mxu0 %v2097_v22  ;;  %745 = vmatpush.msra.mxu1 %v2103_v27  ;;  %2641 = vst [vmem:[#allocation19_spill] sm:$0xff] %v2116_v3  ;;  %v2123_v27 = vld [vmem:[#allocation7 + $0xe0] sm:$0xff] }
 0x273   :  { %760 = vmatpush.msra.mxu2 %v2100_v40  ;;  %v2120_v40 = vld [vmem:[#allocation5 + $0x38] sm:$0xff] }
 0x274   :  { %724 = vmatpush.msra.mxu0 %v2106_v26  ;;  %746 = vmatpush.msra.mxu1 %v2612_v1  ;;  %v2127_v1 = vld [vmem:[#allocation5 + $0x30] sm:$0xff] }
 0x275   :  { %761 = vmatpush.msra.mxu2 %v2109_v42  ;;  %v2130_v42 = vld [vmem:[#allocation7 + $0xd8] sm:$0xff] }
 0x276   :  { %725 = vmatpush.msra.mxu0 %v2113_v2  ;;  %747 = vmatpush.msra.mxu1 %v2616_v5  ;;  %v2134_v5 = vld [vmem:[#allocation5 + $0x28] sm:$0xff] }
 0x277   :  { %762 = vmatpush.msra.mxu2 %v2116_v3  ;;  %v2137_v3 = vld [vmem:[#allocation7 + $0xd0] sm:$0xff] }
 0x278   :  { %726 = vmatpush.msra.mxu0 %v2120_v40  ;;  %748 = vmatpush.msra.mxu1 %v2619_v10  ;;  %2642 = vst [vmem:[#allocation21_spill] sm:$0xff] %v2137_v3  ;;  %v2142_v10 = vld [vmem:[#allocation7 + $0xc8] sm:$0xff] }
 0x279   :  { %763 = vmatpush.msra.mxu2 %v2123_v27 }
 0x27a   :  { %727 = vmatpush.msra.mxu0 %v2127_v1  ;;  %749 = vmatpush.msra.mxu1 %v2621_v13  ;;  %v2147_v13 = vld [vmem:[#allocation7 + $0xc0] sm:$0xff] }
 0x27b   :  { %764 = vmatpush.msra.mxu2 %v2130_v42 }
 0x27c   :  { %728 = vmatpush.msra.mxu0 %v2134_v5  ;;  %750 = vmatpush.msra.mxu1 %v2623_v18 }
 0x27d   :  { %765 = vmatpush.msra.mxu2 %v2137_v3  ;;  %v2152_v3 = vld [vmem:[#allocation7 + $0xb8] sm:$0xff] }
 0x27e   :  { %729 = vmatpush.msra.mxu0 %v2622_v15  ;;  %751 = vmatpush.msra.mxu1 %v2625_v51 }
 0x27f   :  { %766 = vmatpush.msra.mxu2 %v2142_v10 }
 0x280   :  { %730 = vmatpush.msra.mxu0 %v2624_v48  ;;  %752 = vmatpush.msra.mxu1 %v2627_v23  ;;  %v2653_v23 = vld [vmem:[#allocation55_spill] sm:$0xff] }
 0x281   :  { %767 = vmatpush.msra.mxu2 %v2147_v13 }
 0x282   :  { %731 = vmatpush.msra.mxu0 %v2626_v19  ;;  %753 = vmatpush.msra.mxu1 %v2602_v7  ;;  %v501_v7 = vld [vmem:[#allocation2 + $0x20] sm:$0xff] }
 0x283   :  { %768 = vmatpush.msra.mxu2 %v2152_v3 }
 0x284   :  { %732 = vmatpush.msra.mxu0 %v2603_v8  ;;  %754 = vmatpush.msra.mxu1 %v2629_v11  ;;  %v2227_v11 = vld [vmem:[#allocation7 + $0x38] sm:$0xff] }
 0x285   :  { %769 = vmatpush.msra.mxu2 %v1602_v32 }
 0x286   :  { %733 = vmatpush.msra.mxu0 %v2628_v38  ;;  %755 = vmatpush.msra.mxu1 %v2631_v24  ;;  %v2222_v38 = vld [vmem:[#allocation7 + $0x40] sm:$0xff]  ;;  %v2232_v24 = vld [vmem:[#allocation7 + $0x30] sm:$0xff] }
 0x287   :  { %770 = vmatpush.msra.mxu2 %v1656_v39 }
 0x289   :  { %771 = vmatpush.msra.mxu2 %v2633_v20  ;;  %v1226_v20 = vld [vmem:[#allocation5 + $0x20] sm:$0xff] }
 0x28b   :  { %772 = vmatpush.msra.mxu2 %v1669_v43 }
 0x28d   :  { %773 = vmatpush.msra.mxu2 %v1673_v45 }
 0x28f   :  { %774 = vmatpush.msra.mxu2 %v2634_v16  ;;  %v2236_v16 = vld [vmem:[#allocation7 + $0x28] sm:$0xff] }
 0x291   :  { %775 = vmatpush.msra.mxu2 %v2635_v33  ;;  %v1228_v33 = vld [vmem:[#allocation5 + $0x18] sm:$0xff] }
 0x2d5   :  { %v519_v32 = vpop.f32.mrf.mxu2  ;;  %v541_v18 = vpop.f32.mrf.mxu3 }
 0x2d6   :  { %v522_v8 = vadd.f32 %v519_v32, %v501_v7  ;;  %v542_v39 = vadd.f32 %v1849_v14, %v541_v18  ;;  %v2256_v7 = vld [vmem:[#allocation7] sm:$0xff]  ;;  %v2260_v32 = vld [vmem:[#allocation7 + $0xb0] sm:$0xff]  ;;  %v2269_v18 = vld [vmem:[#allocation7 + $0x98] sm:$0xff] }
 0x2d8   :  { %1154 = vtanh.f32 %v522_v8  ;;  %v2263_v8 = vld [vmem:[#allocation7 + $0xa8] sm:$0xff] }
 0x2de   :  { %v1155_v15 = vpop.eup %1154 }
 0x2df   :  { %626 = vmatmul.f32.vlgmr.msra.gmra.mxu3 %v1155_v15  ;;  %648 = vmatmul.f32.vlgmr.msrb.gmra.mxu0 %v1155_v15  ;;  %v2266_v15 = vld [vmem:[#allocation7 + $0xa0] sm:$0xff] }
 0x2e0   :  { %781 = vmatpush.msra.mxu3 %v1691_v49  ;;  %801 = vmatpush.msrb.mxu0 %v2636_v9  ;;  %v2240_v9 = vld [vmem:[#allocation7 + $0x20] sm:$0xff] }
 0x2e2   :  { %782 = vmatpush.msra.mxu3 %v1697_v50  ;;  %802 = vmatpush.msrb.mxu0 %v1701_v52 }
 0x2e3   :  { %v561_v43 = vpop.f32.mrf.mxu0  ;;  %v582_v45 = vpop.f32.mrf.mxu1 }
 0x2e4   :  { %v562_v48 = vadd.f32 %v561_v43, %v542_v39  ;;  %v583_v51 = vadd.f32 %v1943_v41, %v582_v45  ;;  %783 = vmatpush.msra.mxu3 %v1706_v53  ;;  %803 = vmatpush.msrb.mxu0 %v1708_v54  ;;  %v2272_v39 = vld [vmem:[#allocation7 + $0x90] sm:$0xff]  ;;  %v2275_v43 = vld [vmem:[#allocation7 + $0x88] sm:$0xff]  ;;  %v2278_v45 = vld [vmem:[#allocation7 + $0x80] sm:$0xff] }
 0x2e5   :  { %v602_v19 = vpop.f32.mrf.mxu2 }
 0x2e6   :  { %1156 = vtanh.f32 %v562_v48  ;;  %v603_v49 = vadd.f32 %v602_v19, %v583_v51  ;;  %784 = vmatpush.msra.mxu3 %v1713_v55  ;;  %804 = vmatpush.msrb.mxu0 %v1773_v59  ;;  %v2643_v55 = vld [vmem:[#allocation51_spill] sm:$0xff]  ;;  %v609_v48 = vld [vmem:[#allocation2 + $0x28] sm:$0xff] }
 0x2e8   :  { %1158 = vtanh.f32 %v603_v49  ;;  %785 = vmatpush.msra.mxu3 %v1718_v56  ;;  %805 = vmatpush.msrb.mxu0 %v1779_v61  ;;  %v2644_v56 = vld [vmem:[#allocation47_spill] sm:$0xff] }
 0x2ea   :  { %786 = vmatpush.msra.mxu3 %v1722_v57  ;;  %806 = vmatpush.msrb.mxu0 %v1785_v37  ;;  %v2646_v57 = vld [vmem:[#allocation17_spill] sm:$0xff] }
 0x2ec   :  { %v1157_v50 = vpop.eup %1156  ;;  %787 = vmatpush.msra.mxu3 %v1726_v58  ;;  %807 = vmatpush.msrb.mxu0 %v1791_v36  ;;  %v2647_v58 = vld [vmem:[#allocation48_spill] sm:$0xff] }
 0x2ed   :  { %668 = vmatmul.f32.vlgmr.msrb.gmra.mxu1 %v1157_v50  ;;  %689 = vmatmul.f32.vlgmr.msrb.gmra.mxu2 %v1157_v50 }
 0x2ee   :  { %v1159_v52 = vpop.eup %1158  ;;  %788 = vmatpush.msra.mxu3 %v1771_v63  ;;  %808 = vmatpush.msrb.mxu0 %v1797_v35  ;;  %v2648_v63 = vld [vmem:[#allocation53_spill] sm:$0xff] }
 0x2ef   :  { %1160 = vtanh.f32 %v1159_v52  ;;  %709 = vmatmul.f32.vlgmr.msrb.gmra.mxu3 %v1159_v52  ;;  %826 = vmatpush.msrb.mxu1 %v2055_v0  ;;  %v1230_v0 = vld [vmem:[#allocation5 + $0x10] sm:$0xff] }
 0x2f0   :  { %789 = vmatpush.msra.mxu3 %v1777_v60  ;;  %809 = vmatpush.msrb.mxu0 %v1803_v34  ;;  %v2650_v60 = vld [vmem:[#allocation49_spill] sm:$0xff] }
 0x2f1   :  { %827 = vmatpush.msrb.mxu1 %v2065_v12  ;;  %848 = vmatpush.msrb.mxu2 %v2058_v4  ;;  %v2657_v12 = vld [vmem:[#allocation21_spill] sm:$0xff] }
 0x2f2   :  { %790 = vmatpush.msra.mxu3 %v1783_v62  ;;  %810 = vmatpush.msrb.mxu0 %v1809_v31  ;;  %v2216_v62 = vld [vmem:[#allocation7 + $0x48] sm:$0xff] }
 0x2f3   :  { %828 = vmatpush.msrb.mxu1 %v2073_v17  ;;  %849 = vmatpush.msrb.mxu2 %v2068_v21  ;;  %v1232_v17 = vld [vmem:[#allocation5 + $0x8] sm:$0xff] }
 0x2f4   :  { %791 = vmatpush.msra.mxu3 %v1789_v46  ;;  %811 = vmatpush.msrb.mxu0 %v1813_v28  ;;  %v2645_v46 = vld [vmem:[#allocation52_spill] sm:$0xff] }
 0x2f5   :  { %v1161_v53 = vpop.eup %1160  ;;  %829 = vmatpush.msrb.mxu1 %v2081_v47  ;;  %850 = vmatpush.msrb.mxu2 %v2076_v29  ;;  %v2248_v47 = vld [vmem:[#allocation7 + $0x10] sm:$0xff] }
 0x2f6   :  { %v2199_v54 = vadd.f32 %v1161_v53, %v2061_v6  ;;  %792 = vmatpush.msra.mxu3 %v1795_v44  ;;  %812 = vmatpush.msrb.mxu0 %v2643_v55  ;;  %v2649_v44 = vld [vmem:[#allocation41_spill] sm:$0xff]  ;;  %v2244_v6 = vld [vmem:[#allocation7 + $0x18] sm:$0xff] }
 0x2f7   :  { %830 = vmatpush.msrb.mxu1 %v2089_v30  ;;  %851 = vmatpush.msrb.mxu2 %v2084_v25  ;;  %v2651_v30 = vld [vmem:[#allocation54_spill] sm:$0xff] }
 0x2f8   :  { %793 = vmatpush.msra.mxu3 %v2644_v56  ;;  %813 = vmatpush.msrb.mxu0 %v2645_v46 }
 0x2f9   :  { %831 = vmatpush.msrb.mxu1 %v2097_v22  ;;  %852 = vmatpush.msrb.mxu2 %v2646_v57  ;;  %v2652_v22 = vld [vmem:[#allocation50_spill] sm:$0xff] }
 0x2fa   :  { %794 = vmatpush.msra.mxu3 %v2647_v58  ;;  %814 = vmatpush.msrb.mxu0 %v2648_v63  ;;  %v2282_v58 = vld [vmem:[#allocation8 + $0x78] sm:$0xff] }
 0x2fb   :  { %832 = vmatpush.msrb.mxu1 %v2106_v26  ;;  %853 = vmatpush.msrb.mxu2 %v2649_v44  ;;  %v2654_v26 = vld [vmem:[#allocation18_spill] sm:$0xff] }
 0x2fc   :  { %795 = vmatpush.msra.mxu3 %v2650_v60  ;;  %815 = vmatpush.msrb.mxu0 %v2651_v30  ;;  %v2285_v60 = vld [vmem:[#allocation8 + $0xf8] sm:$0xff] }
 0x2fd   :  { %833 = vmatpush.msrb.mxu1 %v2113_v2  ;;  %854 = vmatpush.msrb.mxu2 %v2216_v62  ;;  %v2655_v2 = vld [vmem:[#allocation36_spill] sm:$0xff] }
 0x2fe   :  { %796 = vmatpush.msra.mxu3 %v2652_v22  ;;  %816 = vmatpush.msrb.mxu0 %v2653_v23  ;;  %v2288_v22 = vld [vmem:[#allocation8 + $0x70] sm:$0xff] }
 0x2ff   :  { %834 = vmatpush.msrb.mxu1 %v2120_v40  ;;  %855 = vmatpush.msrb.mxu2 %v2222_v38  ;;  %v2656_v40 = vld [vmem:[#allocation19_spill] sm:$0xff] }
 0x300   :  { %868 = vmatpush.msrb.mxu3 %v2654_v26 }
 0x301   :  { %835 = vmatpush.msrb.mxu1 %v2127_v1  ;;  %856 = vmatpush.msrb.mxu2 %v2227_v11  ;;  %v1234_v1 = vld [vmem:[#allocation5] sm:$0xff] }
 0x302   :  { %869 = vmatpush.msrb.mxu3 %v2655_v2 }
 0x303   :  { %836 = vmatpush.msrb.mxu1 %v2134_v5  ;;  %857 = vmatpush.msrb.mxu2 %v2232_v24  ;;  %v2252_v5 = vld [vmem:[#allocation7 + $0x8] sm:$0xff] }
 0x304   :  { %870 = vmatpush.msrb.mxu3 %v2656_v40 }
 0x305   :  { %837 = vmatpush.msrb.mxu1 %v1226_v20  ;;  %858 = vmatpush.msrb.mxu2 %v2236_v16  ;;  %v2291_v20 = vld [vmem:[#allocation8 + $0xf0] sm:$0xff] }
 0x306   :  { %871 = vmatpush.msrb.mxu3 %v2123_v27 }
 0x307   :  { %838 = vmatpush.msrb.mxu1 %v1228_v33  ;;  %859 = vmatpush.msrb.mxu2 %v2240_v9 }
 0x308   :  { %872 = vmatpush.msrb.mxu3 %v2130_v42 }
 0x309   :  { %839 = vmatpush.msrb.mxu1 %v1230_v0  ;;  %860 = vmatpush.msrb.mxu2 %v2244_v6  ;;  %v2295_v0 = vld [vmem:[#allocation8 + $0x68] sm:$0xff] }
 0x30a   :  { %873 = vmatpush.msrb.mxu3 %v2657_v12 }
 0x30b   :  { %840 = vmatpush.msrb.mxu1 %v1232_v17  ;;  %861 = vmatpush.msrb.mxu2 %v2248_v47  ;;  %v2298_v17 = vld [vmem:[#allocation8 + $0xe8] sm:$0xff] }
 0x30c   :  { %874 = vmatpush.msrb.mxu3 %v2142_v10 }
 0x30d   :  { %841 = vmatpush.msrb.mxu1 %v1234_v1  ;;  %862 = vmatpush.msrb.mxu2 %v2252_v5 }
 0x30e   :  { %875 = vmatpush.msrb.mxu3 %v2147_v13 }
 0x30f   :  { %863 = vmatpush.msrb.mxu2 %v2256_v7 }
 0x310   :  { %876 = vmatpush.msrb.mxu3 %v2152_v3 }
 0x312   :  { %877 = vmatpush.msrb.mxu3 %v2260_v32 }
 0x314   :  { %878 = vmatpush.msrb.mxu3 %v2263_v8 }
 0x316   :  { %879 = vmatpush.msrb.mxu3 %v2266_v15 }
 0x318   :  { %880 = vmatpush.msrb.mxu3 %v2269_v18 }
 0x31a   :  { %881 = vmatpush.msrb.mxu3 %v2272_v39 }
 0x31c   :  { %882 = vmatpush.msrb.mxu3 %v2275_v43 }
 0x31e   :  { %883 = vmatpush.msrb.mxu3 %v2278_v45 }
 0x35c   :  { %v649_v49 = vpop.f32.mrf.mxu0 }
 0x35d   :  { %v650_v50 = vadd.f32 %v1849_v14, %v649_v49  ;;  %v2305_v49 = vld [vmem:[#allocation8 + $0x58] sm:$0xff] }
 0x362   :  { %v627_v51 = vpop.f32.mrf.mxu3 }
 0x363   :  { %v630_v19 = vadd.f32 %v627_v51, %v609_v48 }
 0x365   :  { %1162 = vtanh.f32 %v630_v19  ;;  %v2301_v19 = vld [vmem:[#allocation8 + $0x60] sm:$0xff] }
 0x36a   :  { %v669_v52 = vpop.f32.mrf.mxu1 }
 0x36b   :  { %v1163_v53 = vpop.eup %1162  ;;  %v670_v56 = vadd.f32 %v669_v52, %v650_v50  ;;  %v2311_v50 = vld [vmem:[#allocation8 + $0x50] sm:$0xff] }
 0x36c   :  { %734 = vmatmul.f32.vlgmr.msra.gmra.mxu0 %v1163_v53  ;;  %756 = vmatmul.f32.vlgmr.msra.gmra.mxu1 %v1163_v53 }
 0x36d   :  { %1164 = vtanh.f32 %v670_v56  ;;  %889 = vmatpush.msra.mxu0 %v2282_v58  ;;  %909 = vmatpush.msra.mxu1 %v2285_v60 }
 0x36f   :  { %890 = vmatpush.msra.mxu0 %v2288_v22  ;;  %910 = vmatpush.msra.mxu1 %v2291_v20 }
 0x370   :  { %v690_v14 = vpop.f32.mrf.mxu2 }
 0x371   :  { %v691_v33 = vadd.f32 %v1943_v41, %v690_v14  ;;  %891 = vmatpush.msra.mxu0 %v2295_v0  ;;  %911 = vmatpush.msra.mxu1 %v2298_v17 }
 0x372   :  { %v710_v1 = vpop.f32.mrf.mxu3 }
 0x373   :  { %v1165_v48 = vpop.eup %1164  ;;  %v711_v51 = vadd.f32 %v710_v1, %v691_v33  ;;  %892 = vmatpush.msra.mxu0 %v2301_v19  ;;  %912 = vmatpush.msra.mxu1 %v1773_v59  ;;  %v2317_v59 = vld [vmem:[#allocation8 + $0x48] sm:$0xff] }
 0x374   :  { %776 = vmatmul.f32.vlgmr.msra.gmra.mxu2 %v1165_v48  ;;  %797 = vmatmul.f32.vlgmr.msra.gmra.mxu3 %v1165_v48 }
 0x375   :  { %1166 = vtanh.f32 %v711_v51  ;;  %893 = vmatpush.msra.mxu0 %v2305_v49  ;;  %913 = vmatpush.msra.mxu1 %v1779_v61  ;;  %v1075_v51 = vld [vmem:[#allocation10 + $0x78] sm:$0xff] }
 0x376   :  { %932 = vmatpush.msra.mxu2 %v2058_v4  ;;  %952 = vmatpush.msra.mxu3 %v2654_v26  ;;  %v2323_v4 = vld [vmem:[#allocation8 + $0x40] sm:$0xff]  ;;  %v1265_v26 = vld [vmem:[#allocation8 + $0xd8] sm:$0xff] }
 0x377   :  { %894 = vmatpush.msra.mxu0 %v2311_v50  ;;  %914 = vmatpush.msra.mxu1 %v1785_v37  ;;  %v2328_v37 = vld [vmem:[#allocation8 + $0x38] sm:$0xff] }
 0x378   :  { %933 = vmatpush.msra.mxu2 %v2068_v21  ;;  %953 = vmatpush.msra.mxu3 %v2655_v2  ;;  %v2373_v21 = vld [vmem:[#allocation8] sm:$0xff] }
 0x379   :  { %895 = vmatpush.msra.mxu0 %v2317_v59  ;;  %915 = vmatpush.msra.mxu1 %v1791_v36  ;;  %v2334_v36 = vld [vmem:[#allocation8 + $0x30] sm:$0xff] }
 0x37a   :  { %934 = vmatpush.msra.mxu2 %v2076_v29  ;;  %954 = vmatpush.msra.mxu3 %v2656_v40 }
 0x37b   :  { %v1167_v61 = vpop.eup %1166  ;;  %896 = vmatpush.msra.mxu0 %v2323_v4  ;;  %916 = vmatpush.msra.mxu1 %v1797_v35  ;;  %v2349_v35 = vld [vmem:[#allocation8 + $0x20] sm:$0xff] }
 0x37c   :  { %1168 = vtanh.f32 %v1167_v61  ;;  %817 = vmatmul.f32.vlgmr.msrb.gmra.mxu0 %v1167_v61  ;;  %935 = vmatpush.msra.mxu2 %v2084_v25  ;;  %v2340_v25 = vld [vmem:[#allocation8 + $0x28] sm:$0xff] }
 0x37d   :  { %897 = vmatpush.msra.mxu0 %v2328_v37  ;;  %917 = vmatpush.msra.mxu1 %v1803_v34 }
 0x37e   :  { %936 = vmatpush.msra.mxu2 %v2646_v57  ;;  %955 = vmatpush.msra.mxu3 %v2123_v27 }
 0x37f   :  { %898 = vmatpush.msra.mxu0 %v2334_v36  ;;  %918 = vmatpush.msra.mxu1 %v1809_v31  ;;  %v2355_v31 = vld [vmem:[#allocation8 + $0x18] sm:$0xff] }
 0x380   :  { %937 = vmatpush.msra.mxu2 %v2649_v44  ;;  %956 = vmatpush.msra.mxu3 %v2130_v42  ;;  %v2367_v42 = vld [vmem:[#allocation8 + $0x8] sm:$0xff] }
 0x381   :  { %899 = vmatpush.msra.mxu0 %v2340_v25  ;;  %919 = vmatpush.msra.mxu1 %v1813_v28  ;;  %v2361_v28 = vld [vmem:[#allocation8 + $0x10] sm:$0xff] }
 0x382   :  { %v1169_v34 = vpop.eup %1168  ;;  %938 = vmatpush.msra.mxu2 %v2216_v62  ;;  %957 = vmatpush.msra.mxu3 %v2657_v12  ;;  %v1271_v12 = vld [vmem:[#allocation8 + $0xa8] sm:$0xff] }
 0x383   :  { %v2347_v27 = vadd.f32 %v1169_v34, %v2199_v54  ;;  %900 = vmatpush.msra.mxu0 %v2349_v35  ;;  %920 = vmatpush.msra.mxu1 %v2643_v55  ;;  %v2409_v55 = vld [vmem:[%s2449_s3] ss:$0 sm:$0xff] }
 0x384   :  { %939 = vmatpush.msra.mxu2 %v2222_v38  ;;  %958 = vmatpush.msra.mxu3 %v2142_v10  ;;  %v1264_v38 = vld [vmem:[#allocation8 + $0xe0] sm:$0xff] }
 0x385   :  { %901 = vmatpush.msra.mxu0 %v2355_v31  ;;  %921 = vmatpush.msra.mxu1 %v2645_v46 }
 0x386   :  { %940 = vmatpush.msra.mxu2 %v2227_v11  ;;  %959 = vmatpush.msra.mxu3 %v2147_v13  ;;  %v1266_v11 = vld [vmem:[#allocation8 + $0xd0] sm:$0xff] }
 0x387   :  { %902 = vmatpush.msra.mxu0 %v2361_v28  ;;  %922 = vmatpush.msra.mxu1 %v2648_v63 }
 0x388   :  { %941 = vmatpush.msra.mxu2 %v2232_v24  ;;  %960 = vmatpush.msra.mxu3 %v2152_v3  ;;  %v717_v3 = vld [vmem:[#allocation2 + $0x30] sm:$0xff]  ;;  %v1267_v24 = vld [vmem:[#allocation8 + $0xc8] sm:$0xff] }
 0x389   :  { %903 = vmatpush.msra.mxu0 %v2367_v42  ;;  %923 = vmatpush.msra.mxu1 %v2651_v30 }
 0x38a   :  { %942 = vmatpush.msra.mxu2 %v2236_v16  ;;  %961 = vmatpush.msra.mxu3 %v2260_v32  ;;  %v1268_v16 = vld [vmem:[#allocation8 + $0xc0] sm:$0xff]  ;;  %v1273_v32 = vld [vmem:[#allocation8 + $0x98] sm:$0xff] }
 0x38b   :  { %904 = vmatpush.msra.mxu0 %v2373_v21  ;;  %924 = vmatpush.msra.mxu1 %v2653_v23 }
 0x38c   :  { %943 = vmatpush.msra.mxu2 %v2240_v9  ;;  %962 = vmatpush.msra.mxu3 %v2263_v8  ;;  %v1269_v9 = vld [vmem:[#allocation8 + $0xb8] sm:$0xff]  ;;  %v1274_v8 = vld [vmem:[#allocation8 + $0x90] sm:$0xff] }
 0x38d   :  { %973 = vmatpush.msrb.mxu0 %v2282_v58 }
 0x38e   :  { %944 = vmatpush.msra.mxu2 %v2244_v6  ;;  %963 = vmatpush.msra.mxu3 %v2266_v15  ;;  %v1270_v6 = vld [vmem:[#allocation8 + $0xb0] sm:$0xff]  ;;  %v1275_v15 = vld [vmem:[#allocation8 + $0x88] sm:$0xff] }
 0x38f   :  { %974 = vmatpush.msrb.mxu0 %v2288_v22 }
 0x390   :  { %945 = vmatpush.msra.mxu2 %v2248_v47  ;;  %964 = vmatpush.msra.mxu3 %v2269_v18  ;;  %v1276_v18 = vld [vmem:[#allocation8 + $0x80] sm:$0xff] }
 0x391   :  { %975 = vmatpush.msrb.mxu0 %v2295_v0 }
 0x392   :  { %946 = vmatpush.msra.mxu2 %v2252_v5  ;;  %965 = vmatpush.msra.mxu3 %v2272_v39  ;;  %v1272_v5 = vld [vmem:[#allocation8 + $0xa0] sm:$0xff]  ;;  %v825_v39 = vld [vmem:[#allocation2 + $0x38] sm:$0xff] }
 0x393   :  { %976 = vmatpush.msrb.mxu0 %v2301_v19 }
 0x394   :  { %947 = vmatpush.msra.mxu2 %v2256_v7  ;;  %966 = vmatpush.msra.mxu3 %v2275_v43 }
 0x395   :  { %977 = vmatpush.msrb.mxu0 %v2305_v49 }
 0x396   :  { %967 = vmatpush.msra.mxu3 %v2278_v45 }
 0x397   :  { %978 = vmatpush.msrb.mxu0 %v2311_v50 }
 0x399   :  { %979 = vmatpush.msrb.mxu0 %v2317_v59 }
 0x39b   :  { %980 = vmatpush.msrb.mxu0 %v2323_v4 }
 0x39d   :  { %981 = vmatpush.msrb.mxu0 %v2328_v37 }
 0x39f   :  { %982 = vmatpush.msrb.mxu0 %v2334_v36 }
 0x3a1   :  { %983 = vmatpush.msrb.mxu0 %v2340_v25 }
 0x3a3   :  { %984 = vmatpush.msrb.mxu0 %v2349_v35 }
 0x3a5   :  { %985 = vmatpush.msrb.mxu0 %v2355_v31 }
 0x3a7   :  { %986 = vmatpush.msrb.mxu0 %v2361_v28 }
 0x3a9   :  { %987 = vmatpush.msrb.mxu0 %v2367_v42 }
 0x3ab   :  { %988 = vmatpush.msrb.mxu0 %v2373_v21 }
 0x3e9   :  { %v735_v29 = vpop.f32.mrf.mxu0  ;;  %v757_v54 = vpop.f32.mrf.mxu1 }
 0x3ea   :  { %v738_v10 = vadd.f32 %v735_v29, %v717_v3  ;;  %v758_v46 = vadd.f32 %v2409_v55, %v757_v54  ;;  %v1070_v3 = vld [vmem:[#allocation10 + $0x50] sm:$0xff]  ;;  %v1069_v29 = vld [vmem:[#allocation10 + $0x48] sm:$0xff] }
 0x3eb   :  { %v1066_v54 = vld [vmem:[#allocation10 + $0x30] sm:$0xff] }
 0x3ec   :  { %1170 = vtanh.f32 %v738_v10  ;;  %v1068_v10 = vld [vmem:[#allocation10 + $0x40] sm:$0xff] }
 0x3f2   :  { %v1171_v13 = vpop.eup %1170 }
 0x3f3   :  { %842 = vmatmul.f32.vlgmr.msrb.gmra.mxu1 %v1171_v13  ;;  %864 = vmatmul.f32.vlgmr.msrb.gmra.mxu2 %v1171_v13  ;;  %v1067_v13 = vld [vmem:[#allocation10 + $0x38] sm:$0xff] }
 0x3f4   :  { %993 = vmatpush.msrb.mxu1 %v2285_v60  ;;  %1016 = vmatpush.msrb.mxu2 %v2282_v58 }
 0x3f6   :  { %994 = vmatpush.msrb.mxu1 %v2291_v20  ;;  %1017 = vmatpush.msrb.mxu2 %v2288_v22 }
 0x3f7   :  { %v777_v57 = vpop.f32.mrf.mxu2  ;;  %v798_v63 = vpop.f32.mrf.mxu3 }
 0x3f8   :  { %v778_v44 = vadd.f32 %v777_v57, %v758_v46  ;;  %v799_v30 = vadd.f32 %v1943_v41, %v798_v63  ;;  %995 = vmatpush.msrb.mxu1 %v2298_v17  ;;  %1018 = vmatpush.msrb.mxu2 %v2295_v0  ;;  %v1064_v46 = vld [vmem:[#allocation10 + $0x20] sm:$0xff]  ;;  %v1063_v57 = vld [vmem:[#allocation10 + $0x18] sm:$0xff]  ;;  %v1062_v63 = vld [vmem:[#allocation10 + $0x10] sm:$0xff] }
 0x3f9   :  { %v818_v62 = vpop.f32.mrf.mxu0 }
 0x3fa   :  { %1172 = vtanh.f32 %v778_v44  ;;  %v819_v23 = vadd.f32 %v818_v62, %v799_v30  ;;  %996 = vmatpush.msrb.mxu1 %v1264_v38  ;;  %1019 = vmatpush.msrb.mxu2 %v2301_v19  ;;  %v1074_v19 = vld [vmem:[#allocation10 + $0x70] sm:$0xff]  ;;  %v1061_v44 = vld [vmem:[#allocation10 + $0x8] sm:$0xff]  ;;  %v1060_v30 = vld [vmem:[#allocation10] sm:$0xff] }
 0x3fc   :  { %1174 = vtanh.f32 %v819_v23  ;;  %997 = vmatpush.msrb.mxu1 %v1265_v26  ;;  %1020 = vmatpush.msrb.mxu2 %v2305_v49  ;;  %v1277_v49 = vld [vmem:[%s2451_s5] ss:$0 sm:$0xff] }
 0x3fe   :  { %998 = vmatpush.msrb.mxu1 %v1266_v11  ;;  %1021 = vmatpush.msrb.mxu2 %v2311_v50 }
 0x400   :  { %v1173_v2 = vpop.eup %1172  ;;  %999 = vmatpush.msrb.mxu1 %v1267_v24  ;;  %1022 = vmatpush.msrb.mxu2 %v2317_v59 }
 0x401   :  { %884 = vmatmul.f32.vlgmr.msrb.gmra.mxu3 %v1173_v2  ;;  %905 = vmatmul.f32.vlgmr.msra.gmra.mxu0 %v1173_v2 }
 0x402   :  { %v1175_v40 = vpop.eup %1174  ;;  %1000 = vmatpush.msrb.mxu1 %v1268_v16  ;;  %1036 = vmatpush.msrb.mxu3 %v2285_v60 }
 0x403   :  { %1176 = vtanh.f32 %v1175_v40  ;;  %925 = vmatmul.f32.vlgmr.msra.gmra.mxu1 %v1175_v40  ;;  %1023 = vmatpush.msrb.mxu2 %v2323_v4 }
 0x404   :  { %1001 = vmatpush.msrb.mxu1 %v1269_v9  ;;  %1037 = vmatpush.msrb.mxu3 %v2291_v20 }
 0x405   :  { %1024 = vmatpush.msrb.mxu2 %v2328_v37  ;;  %1080 = vmatpush.msra.mxu0 %v1075_v51 }
 0x406   :  { %1002 = vmatpush.msrb.mxu1 %v1270_v6  ;;  %1038 = vmatpush.msrb.mxu3 %v2298_v17 }
 0x407   :  { %1025 = vmatpush.msrb.mxu2 %v2334_v36  ;;  %1081 = vmatpush.msra.mxu0 %v1074_v19 }
 0x408   :  { %1003 = vmatpush.msrb.mxu1 %v1271_v12  ;;  %1039 = vmatpush.msrb.mxu3 %v1264_v38 }
 0x409   :  { %v1177_v47 = vpop.eup %1176  ;;  %1026 = vmatpush.msrb.mxu2 %v2340_v25 }
 0x40a   :  { %1004 = vmatpush.msrb.mxu1 %v1272_v5  ;;  %1040 = vmatpush.msrb.mxu3 %v1265_v26  ;;  %v823_v7 = vadd.f32 %v1177_v47, %v2347_v27 }
 0x40b   :  { %1027 = vmatpush.msrb.mxu2 %v2349_v35 }
 0x40c   :  { %1005 = vmatpush.msrb.mxu1 %v1273_v32  ;;  %1041 = vmatpush.msrb.mxu3 %v1266_v11 }
 0x40d   :  { %1028 = vmatpush.msrb.mxu2 %v2355_v31 }
 0x40e   :  { %1006 = vmatpush.msrb.mxu1 %v1274_v8  ;;  %1042 = vmatpush.msrb.mxu3 %v1267_v24 }
 0x40f   :  { %1029 = vmatpush.msrb.mxu2 %v2361_v28  ;;  %v1073_v28 = vld [vmem:[#allocation10 + $0x68] sm:$0xff] }
 0x410   :  { %1007 = vmatpush.msrb.mxu1 %v1275_v15  ;;  %1043 = vmatpush.msrb.mxu3 %v1268_v16  ;;  %v1131_v16 = vld [vmem:[%s2453_s7] ss:$0 sm:$0xff] }
 0x411   :  { %1030 = vmatpush.msrb.mxu2 %v2367_v42  ;;  %1082 = vmatpush.msra.mxu0 %v1073_v28  ;;  %v1072_v42 = vld [vmem:[#allocation10 + $0x60] sm:$0xff] }
 0x412   :  { %1008 = vmatpush.msrb.mxu1 %v1276_v18  ;;  %1044 = vmatpush.msrb.mxu3 %v1269_v9 }
 0x413   :  { %1031 = vmatpush.msrb.mxu2 %v2373_v21  ;;  %1083 = vmatpush.msra.mxu0 %v1072_v42  ;;  %v1071_v21 = vld [vmem:[#allocation10 + $0x58] sm:$0xff] }
 0x414   :  { %1045 = vmatpush.msrb.mxu3 %v1270_v6 }
 0x415   :  { %1084 = vmatpush.msra.mxu0 %v1071_v21 }
 0x416   :  { %1046 = vmatpush.msrb.mxu3 %v1271_v12 }
 0x417   :  { %1085 = vmatpush.msra.mxu0 %v1070_v3 }
 0x418   :  { %1047 = vmatpush.msrb.mxu3 %v1272_v5 }
 0x419   :  { %1086 = vmatpush.msra.mxu0 %v1069_v29 }
 0x41a   :  { %1048 = vmatpush.msrb.mxu3 %v1273_v32 }
 0x41b   :  { %1087 = vmatpush.msra.mxu0 %v1068_v10 }
 0x41c   :  { %1049 = vmatpush.msrb.mxu3 %v1274_v8 }
 0x41d   :  { %1088 = vmatpush.msra.mxu0 %v1067_v13 }
 0x41e   :  { %1050 = vmatpush.msrb.mxu3 %v1275_v15 }
 0x41f   :  { %1089 = vmatpush.msra.mxu0 %v1066_v54 }
 0x420   :  { %1051 = vmatpush.msrb.mxu3 %v1276_v18 }
 0x470   :  { %v843_v43 = vpop.f32.mrf.mxu1 }
 0x471   :  { %v846_v45 = vadd.f32 %v843_v43, %v825_v39 }
 0x473   :  { %1178 = vtanh.f32 %v846_v45 }
 0x476   :  { %v865_v58 = vpop.f32.mrf.mxu2 }
 0x477   :  { %v866_v20 = vadd.f32 %v2409_v55, %v865_v58 }
 0x479   :  { %v1179_v52 = vpop.eup %1178 }
 0x47a   :  { %948 = vmatmul.f32.vlgmr.msra.gmra.mxu2 %v1179_v52 }
 0x47e   :  { %v906_v53 = vpop.f32.mrf.mxu0 }
 0x47f   :  { %v907_v56 = vadd.f32 %v1943_v41, %v906_v53 }
 0x480   :  { %v926_v60 = vpop.f32.mrf.mxu1 }
 0x481   :  { %v927_v22 = vadd.f32 %v926_v60, %v907_v56 }
 0x483   :  { %1180 = vtanh.f32 %v927_v22 }
 0x484   :  { %v885_v14 = vpop.f32.mrf.mxu3 }
 0x485   :  { %v886_v33 = vadd.f32 %v885_v14, %v866_v20 }
 0x487   :  { %1182 = vtanh.f32 %v886_v33 }
 0x489   :  { %v1181_v0 = vpop.eup %1180 }
 0x48a   :  { %1184 = vtanh.f32 %v1181_v0  ;;  %1009 = vmatmul.f32.vlgmr.msrb.gmra.mxu1 %v1181_v0 }
 0x48d   :  { %v1183_v17 = vpop.eup %1182 }
 0x48e   :  { %968 = vmatmul.f32.vlgmr.msra.gmra.mxu3 %v1183_v17  ;;  %989 = vmatmul.f32.vlgmr.msrb.gmra.mxu0 %v1183_v17 }
 0x490   :  { %v1185_v1 = vpop.eup %1184 }
 0x491   :  { %v931_v48 = vadd.f32 %v1185_v1, %v823_v7 }
 0x4fd   :  { %v949_v59 = vpop.f32.mrf.mxu2 }
 0x4fe   :  { %v950_v37 = vadd.f32 %v2409_v55, %v949_v59  ;;  %v1065_v55 = vld [vmem:[#allocation10 + $0x28] sm:$0xff] }
 0x4ff   :  { %1090 = vmatpush.msra.mxu0 %v1065_v55 }
 0x501   :  { %1091 = vmatpush.msra.mxu0 %v1064_v46 }
 0x503   :  { %1092 = vmatpush.msra.mxu0 %v1063_v57 }
 0x505   :  { %1093 = vmatpush.msra.mxu0 %v1062_v63 }
 0x507   :  { %v1010_v61 = vpop.f32.mrf.mxu1  ;;  %1094 = vmatpush.msra.mxu0 %v1061_v44 }
 0x509   :  { %1095 = vmatpush.msra.mxu0 %v1060_v30 }
 0x50b   :  { %v990_v41 = vpop.f32.mrf.mxu0 }
 0x50c   :  { %v991_v50 = vadd.f32 %v1277_v49, %v990_v41 }
 0x50e   :  { %v1011_v4 = vadd.f32 %v1010_v61, %v991_v50 }
 0x510   :  { %1186 = vtanh.f32 %v1011_v4 }
 0x511   :  { %v969_v36 = vpop.f32.mrf.mxu3 }
 0x512   :  { %v970_v25 = vadd.f32 %v969_v36, %v950_v37 }
 0x514   :  { %1188 = vtanh.f32 %v970_v25 }
 0x516   :  { %v1187_v34 = vpop.eup %1186 }
 0x517   :  { %1190 = vtanh.f32 %v1187_v34  ;;  %1052 = vmatmul.f32.vlgmr.msrb.gmra.mxu3 %v1187_v34 }
 0x51a   :  { %v1189_v27 = vpop.eup %1188 }
 0x51b   :  { %1032 = vmatmul.f32.vlgmr.msrb.gmra.mxu2 %v1189_v27 }
 0x51d   :  { %v1191_v35 = vpop.eup %1190 }
 0x51e   :  { %v1015_v31 = vadd.f32 %v1191_v35, %v931_v48 }
 0x59a   :  { %v1053_v38 = vpop.f32.mrf.mxu3 }
 0x59e   :  { %v1033_v62 = vpop.f32.mrf.mxu2 }
 0x59f   :  { %v1034_v23 = vadd.f32 %v1277_v49, %v1033_v62 }
 0x5a1   :  { %v1054_v26 = vadd.f32 %v1053_v38, %v1034_v23 }
 0x5a3   :  { %1192 = vtanh.f32 %v1054_v26 }
 0x5a9   :  { %v1193_v11 = vpop.eup %1192 }
 0x5aa   :  { %1194 = vtanh.f32 %v1193_v11 }
 0x5b0   :  { %v1195_v2 = vpop.eup %1194 }
 0x5b1   :  { %v1058_v24 = vadd.f32 %v1195_v2, %v1015_v31 }
 0x5b3   :  { %v1059_v40 = vmul.f32 0.125, %v1058_v24 }
 0x5b5   :  { %1096 = vmatmul.f32.vlgmr.msra.gmra.mxu0 %v1059_v40 }
 0x632   :  { %v1097_v9 = vpop.f32.mrf.mxu0 }
 0x633   :  { %v1098_v6 = vadd.f32 %v1131_v16, %v1097_v9 }
 0x635   :  { %1100 = vst [vmem:[#allocation11] sm:$0xff] %v1098_v6 }
 0x636   :  { %1111 = dma.vmem_to_hbm [thread:$0]  %s1107_s14, 128, %s1109_s17, [#allocation4]  }
 0x637   :  { %1428 = dma.done.wait [#allocation4], 128  }
 0x638   :  { %1429 = vsyncadd [#allocation4], 4294967168 }
 0x639   :  { %1116 = vsyncpa [#allocation3], 1 }
 0x63a   :  { %1117 = vsyncpa [#allocation6], 1 }
 0x63b   :  { %1118 = vsyncpa [#allocation9], 1 }
 0x63c   :  { %1119 = vsyncpa [#allocation4], 1 }

</bundles_post_ra>
